<compile_context>
chip_gen: v6e
topology: v6e:2x2x1
jax: 0.10.0
libtpu: 0.0.40
codegen_flags: <defaults>
</compile_context>

<pallas_src>
import math
import functools

import jax
import jax.numpy as jnp
from jax.experimental import pallas as pl
from jax.experimental.pallas import tpu as pltpu

LN_EPS = 1e-5
NEG_INF = -1e9


def _query_vmem_limit():
    # Generation-aware VMEM budget: ~3/4 of physical, capped at 100 MiB (v5e/v6e 128 MiB),
    # which lands near 48 MiB on v7x (64 MiB physical).
    try:
        info = pltpu.get_tpu_info()
        cap = int(getattr(info, "vmem_capacity_bytes", 64 * 1024 * 1024))
    except Exception:
        cap = 64 * 1024 * 1024
    return max(32 * 1024 * 1024, min(cap * 3 // 4, 100 * 1024 * 1024))


_VMEM_LIMIT = _query_vmem_limit()


def _compiler_params():
    return pltpu.CompilerParams(
        dimension_semantics=("parallel",),
        vmem_limit_bytes=_VMEM_LIMIT,
    )


def _pad_rows(x2d, tile):
    """Pad row count up to a multiple of `tile` so every block is full."""
    m = x2d.shape[0]
    pad = (-m) % tile
    if pad:
        x2d = jnp.pad(x2d, ((0, pad), (0, 0)))
    return x2d, m


def _layernorm_f32(y, g, b):
    mean = jnp.mean(y, axis=-1, keepdims=True)
    var = jnp.mean((y - mean) ** 2, axis=-1, keepdims=True)
    return (y - mean) * jax.lax.rsqrt(var + LN_EPS) * g + b


# ----------------------------- Pallas kernels -----------------------------

def _self_attn_addnorm_kernel(len_ref, x_ref, wqkv_ref, bqkv_ref, g_ref, beta_ref, o_ref,
                              *, num_heads):
    # One batch element: fused QKV projection (bf16 MXU), batched multi-head attention with
    # in-kernel causal + pad mask, head concat, residual + LayerNorm.
    b = pl.program_id(0)
    x = x_ref[0]                                       # (T, D) f32 residual stream
    t, d = x.shape
    dh = d // num_heads
    x16 = x.astype(jnp.bfloat16)

    qkv = jnp.dot(x16, wqkv_ref[...], preferred_element_type=jnp.float32) + bqkv_ref[...]
    q = qkv[:, :d].reshape(t, num_heads, dh).astype(jnp.bfloat16)
    k = qkv[:, d:2 * d].reshape(t, num_heads, dh).astype(jnp.bfloat16)
    v = qkv[:, 2 * d:].reshape(t, num_heads, dh).astype(jnp.bfloat16)

    key_pos = jax.lax.broadcasted_iota(jnp.int32, (t, t), 1)
    q_pos = jax.lax.broadcasted_iota(jnp.int32, (t, t), 0)
    masked = (key_pos >= len_ref[b]) | (key_pos > q_pos)
    bias = jnp.where(masked, jnp.float32(NEG_INF), jnp.float32(0.0))

    scale = 1.0 / math.sqrt(dh)
    # TODO(synk): for long speech sequences (Tq,Tk ~ 1-2k) tile Tq and stream Tk with an
    # online softmax so the (H,Tq,Tk) f32 score block stays inside v7x's 64 MiB VMEM.
    s = jnp.einsum('qhd,khd->hqk', q, k,
                   preferred_element_type=jnp.float32) * scale + bias[None]
    s = s - jnp.max(s, axis=-1, keepdims=True)
    p = jnp.exp(s)
    p = p * pl.reciprocal(jnp.sum(p, axis=-1, keepdims=True), approx=True)
    ctx = jnp.einsum('hqk,khd->qhd', p.astype(jnp.bfloat16), v,
                     preferred_element_type=jnp.float32).reshape(t, d)

    o_ref[0] = _layernorm_f32(ctx + x, g_ref[...], beta_ref[...])


def _mem_attn_addnorm_kernel(len_ref, x_ref, mem_ref, wq_ref, bq_ref, wkv_ref, bkv_ref,
                             g_ref, beta_ref, o_ref, *, num_heads):
    # One batch element: fused Q projection (from decoder state) and fused KV projection
    # (from encoder memory, per-layer weights so no redundancy), batched multi-head
    # attention with in-kernel pad mask, residual + LayerNorm.
    b = pl.program_id(0)
    x = x_ref[0]                                       # (T, D)
    mem = mem_ref[0]                                   # (S, D)
    t, d = x.shape
    s_len = mem.shape[0]
    dh = d // num_heads

    q = (jnp.dot(x.astype(jnp.bfloat16), wq_ref[...],
                 preferred_element_type=jnp.float32) + bq_ref[...])
    kv = (jnp.dot(mem.astype(jnp.bfloat16), wkv_ref[...],
                  preferred_element_type=jnp.float32) + bkv_ref[...])
    q = q.reshape(t, num_heads, dh).astype(jnp.bfloat16)
    k = kv[:, :d].reshape(s_len, num_heads, dh).astype(jnp.bfloat16)
    v = kv[:, d:].reshape(s_len, num_heads, dh).astype(jnp.bfloat16)

    key_pos = jax.lax.broadcasted_iota(jnp.int32, (t, s_len), 1)
    bias = jnp.where(key_pos >= len_ref[b], jnp.float32(NEG_INF), jnp.float32(0.0))

    scale = 1.0 / math.sqrt(dh)
    s = jnp.einsum('qhd,khd->hqk', q, k,
                   preferred_element_type=jnp.float32) * scale + bias[None]
    s = s - jnp.max(s, axis=-1, keepdims=True)
    p = jnp.exp(s)
    p = p * pl.reciprocal(jnp.sum(p, axis=-1, keepdims=True), approx=True)
    ctx = jnp.einsum('hqk,khd->qhd', p.astype(jnp.bfloat16), v,
                     preferred_element_type=jnp.float32).reshape(t, d)

    o_ref[0] = _layernorm_f32(ctx + x, g_ref[...], beta_ref[...])


def _ffn_addnorm_kernel(x_ref, w1_ref, b1_ref, w2_ref, b2_ref, g_ref, beta_ref, o_ref):
    # Fused FFN: relu(x@w1+b1) never leaves VMEM; second matmul + residual + LayerNorm.
    x = x_ref[...]                                     # (tm, D) f32
    h = jnp.dot(x.astype(jnp.bfloat16), w1_ref[...],
                preferred_element_type=jnp.float32) + b1_ref[...]
    h = jnp.maximum(h, 0.0)
    y = jnp.dot(h.astype(jnp.bfloat16), w2_ref[...],
                preferred_element_type=jnp.float32) + b2_ref[...]
    o_ref[...] = _layernorm_f32(y + x, g_ref[...], beta_ref[...])


def _head_kernel(x_ref, g_ref, b_ref, w_ref, o_ref):
    # Final fc: LayerNorm -> Linear(no bias, bf16) -> log_softmax, fully fused.
    # TODO(synk): for large vocabularies (tens of thousands) tile the vocab dimension with a
    # running max / sum-exp so fc_w + logits fit v7x's 64 MiB VMEM.
    x = x_ref[...]
    xn = _layernorm_f32(x, g_ref[...], b_ref[...])
    logits = jnp.dot(xn.astype(jnp.bfloat16), w_ref[...],
                     preferred_element_type=jnp.float32)
    mx = jnp.max(logits, axis=-1, keepdims=True)
    s = logits - mx
    lse = jnp.log(jnp.sum(jnp.exp(s), axis=-1, keepdims=True))
    o_ref[...] = s - lse


# ----------------------------- Pallas wrappers -----------------------------

def self_attention_addnorm(x, lengths, p, num_heads):
    b, t, d = x.shape
    kernel = functools.partial(_self_attn_addnorm_kernel, num_heads=num_heads)
    grid_spec = pltpu.PrefetchScalarGridSpec(
        num_scalar_prefetch=1,
        grid=(b,),
        in_specs=[
            pl.BlockSpec((1, t, d), lambda i, lens: (i, 0, 0)),
            pl.BlockSpec((d, 3 * d), lambda i, lens: (0, 0)),
            pl.BlockSpec((1, 3 * d), lambda i, lens: (0, 0)),
            pl.BlockSpec((1, d), lambda i, lens: (0, 0)),
            pl.BlockSpec((1, d), lambda i, lens: (0, 0)),
        ],
        out_specs=pl.BlockSpec((1, t, d), lambda i, lens: (i, 0, 0)),
    )
    return pl.pallas_call(
        kernel,
        grid_spec=grid_spec,
        out_shape=jax.ShapeDtypeStruct((b, t, d), jnp.float32),
        compiler_params=_compiler_params(),
    )(lengths.astype(jnp.int32), x, p["w_qkv"], p["b_qkv"].reshape(1, 3 * d),
      p["ln_g"].reshape(1, d), p["ln_b"].reshape(1, d))


def memory_attention_addnorm(x, memory, lengths, p, num_heads):
    b, t, d = x.shape
    s = memory.shape[1]
    kernel = functools.partial(_mem_attn_addnorm_kernel, num_heads=num_heads)
    grid_spec = pltpu.PrefetchScalarGridSpec(
        num_scalar_prefetch=1,
        grid=(b,),
        in_specs=[
            pl.BlockSpec((1, t, d), lambda i, lens: (i, 0, 0)),
            pl.BlockSpec((1, s, d), lambda i, lens: (i, 0, 0)),
            pl.BlockSpec((d, d), lambda i, lens: (0, 0)),
            pl.BlockSpec((1, d), lambda i, lens: (0, 0)),
            pl.BlockSpec((d, 2 * d), lambda i, lens: (0, 0)),
            pl.BlockSpec((1, 2 * d), lambda i, lens: (0, 0)),
            pl.BlockSpec((1, d), lambda i, lens: (0, 0)),
            pl.BlockSpec((1, d), lambda i, lens: (0, 0)),
        ],
        out_specs=pl.BlockSpec((1, t, d), lambda i, lens: (i, 0, 0)),
    )
    return pl.pallas_call(
        kernel,
        grid_spec=grid_spec,
        out_shape=jax.ShapeDtypeStruct((b, t, d), jnp.float32),
        compiler_params=_compiler_params(),
    )(lengths.astype(jnp.int32), x, memory,
      p["wq"], p["bq"].reshape(1, d),
      p["w_kv"], p["b_kv"].reshape(1, 2 * d),
      p["ln_g"].reshape(1, d), p["ln_b"].reshape(1, d))


def ffn_addnorm(x2d, p):
    m, d = x2d.shape
    dff = p["w1"].shape[1]
    tm = m if m <= 512 else 512            # 512-row tiles: ~85% of HBM roofline for streaming
    xp, m0 = _pad_rows(x2d, tm)
    mp = xp.shape[0]
    out = pl.pallas_call(
        _ffn_addnorm_kernel,
        out_shape=jax.ShapeDtypeStruct((mp, d), jnp.float32),
        grid=(mp // tm,),
        in_specs=[pl.BlockSpec((tm, d), lambda i: (i, 0)),
                  pl.BlockSpec((d, dff), lambda i: (0, 0)),
                  pl.BlockSpec((1, dff), lambda i: (0, 0)),
                  pl.BlockSpec((dff, d), lambda i: (0, 0)),
                  pl.BlockSpec((1, d), lambda i: (0, 0)),
                  pl.BlockSpec((1, d), lambda i: (0, 0)),
                  pl.BlockSpec((1, d), lambda i: (0, 0))],
        out_specs=pl.BlockSpec((tm, d), lambda i: (i, 0)),
        compiler_params=_compiler_params(),
    )(xp, p["w1"], p["b1"].reshape(1, dff), p["w2"], p["b2"].reshape(1, d),
      p["ln_g"].reshape(1, d), p["ln_b"].reshape(1, d))
    return out[:m0]


def ln_fc_logsoftmax(x2d, gamma, beta, w):
    m, d = x2d.shape
    v = w.shape[1]
    tm = m if m <= 256 else 256            # smaller row tile: the (d, V) weight block is large
    xp, m0 = _pad_rows(x2d, tm)
    mp = xp.shape[0]
    out = pl.pallas_call(
        _head_kernel,
        out_shape=jax.ShapeDtypeStruct((mp, v), jnp.float32),
        grid=(mp // tm,),
        in_specs=[pl.BlockSpec((tm, d), lambda i: (i, 0)),
                  pl.BlockSpec((1, d), lambda i: (0, 0)),
                  pl.BlockSpec((1, d), lambda i: (0, 0)),
                  pl.BlockSpec((d, v), lambda i: (0, 0))],
        out_specs=pl.BlockSpec((tm, v), lambda i: (i, 0)),
        compiler_params=_compiler_params(),
    )(xp, gamma.reshape(1, d), beta.reshape(1, d), w)
    return out[:m0]


# ----------------------------- model pieces -----------------------------

def decoder_layer(x, memory, target_lengths, encoder_lengths, p, num_heads):
    b, t, d = x.shape
    # self-attention (QKV projection fused into the kernel, causal + pad mask, AddNorm)
    x = self_attention_addnorm(x, target_lengths, p["self_attn"], num_heads)
    # memory (encoder-decoder) attention (Q and KV projections fused, enc pad mask, AddNorm)
    x = memory_attention_addnorm(x, memory, encoder_lengths, p["mem_attn"], num_heads)
    # position-wise feed-forward: Linear+ReLU+Linear+AddNorm in one kernel
    x2d = ffn_addnorm(x.reshape(b * t, d), p["ffn"])
    return x2d.reshape(b, t, d)


def positional_encoding(length, d_model):
    pos = jnp.arange(length, dtype=jnp.float32)[:, None]
    i = jnp.arange(0, d_model, 2, dtype=jnp.float32)[None, :]
    angle = pos / jnp.power(10000.0, i / d_model)
    pe = jnp.zeros((length, d_model), jnp.float32)
    pe = pe.at[:, 0::2].set(jnp.sin(angle))
    pe = pe.at[:, 1::2].set(jnp.cos(angle))
    return pe


def speech_transformer_decoder_forward(params, encoder_outputs, targets,
                                       encoder_output_lengths, target_lengths,
                                       num_heads, d_model):
    # TODO(synk): the data-dependent `targets[targets != eos_id].view(B, -1)` filtering and the
    # autoregressive (non-teacher-forcing) branch are host-side control flow, not kernels;
    # targets here are assumed eos-free (teacher forcing, ratio=1.0 as in the reference).
    b, t = targets.shape

    # Embedding (scaled by sqrt(d_model), pad row zero) + positional encoding (XLA gather).
    x = params["embedding"][targets] * math.sqrt(d_model)
    x = x + positional_encoding(t, d_model)[None]
    # input_dropout: identity in eval mode.

    for lp in params["layers"]:
        x = decoder_layer(x, encoder_outputs, target_lengths,
                          encoder_output_lengths, lp, num_heads)

    logp = ln_fc_logsoftmax(x.reshape(b * t, d_model),
                            params["fc_ln_g"], params["fc_ln_b"], params["fc_w"])
    return logp.reshape(b, t, -1)


# ----------------------------- parameter init -----------------------------

def init_params(key, num_classes, d_model, d_ff, num_layers, pad_id):
    keys = iter(jax.random.split(key, 8 * num_layers * 8 + 16))
    scale = 0.02

    def nrm(shape):
        # weights stored bf16 in HBM (half the DMA, full-rate bf16 MXU); biases / LN stay f32
        return (jax.random.normal(next(keys), shape, jnp.float32) * scale).astype(jnp.bfloat16)

    emb = (jax.random.normal(next(keys), (num_classes, d_model), jnp.float32) * scale
           ).at[pad_id].set(0.0)                      # padding_idx=pad_id

    def self_attn_params():
        # fused [wq | wk | wv] -- must match the reference concatenation order on checkpoint import
        return dict(
            w_qkv=nrm((d_model, 3 * d_model)),
            b_qkv=jnp.zeros((3 * d_model,), jnp.float32),
            ln_g=jnp.ones((d_model,), jnp.float32),
            ln_b=jnp.zeros((d_model,), jnp.float32))

    def mem_attn_params():
        return dict(
            wq=nrm((d_model, d_model)), bq=jnp.zeros((d_model,), jnp.float32),
            w_kv=nrm((d_model, 2 * d_model)),
            b_kv=jnp.zeros((2 * d_model,), jnp.float32),
            ln_g=jnp.ones((d_model,), jnp.float32),
            ln_b=jnp.zeros((d_model,), jnp.float32))

    layers = []
    for _ in range(num_layers):
        layers.append(dict(
            self_attn=self_attn_params(),
            mem_attn=mem_attn_params(),
            ffn=dict(
                w1=nrm((d_model, d_ff)), b1=jnp.zeros((d_ff,), jnp.float32),
                w2=nrm((d_ff, d_model)), b2=jnp.zeros((d_model,), jnp.float32),
                ln_g=jnp.ones((d_model,), jnp.float32),
                ln_b=jnp.zeros((d_model,), jnp.float32))))

    return dict(
        embedding=emb,
        layers=layers,
        fc_ln_g=jnp.ones((d_model,), jnp.float32),
        fc_ln_b=jnp.zeros((d_model,), jnp.float32),
        fc_w=nrm((d_model, num_classes)))


# ----------------------------- main -----------------------------

if __name__ == "__main__":
    B, T, S = 2, 8, 16
    d_model, num_heads, d_ff, num_layers, num_classes = 128, 2, 256, 2, 48
    pad_id, sos_id, eos_id = 0, 1, 2

    key = jax.random.PRNGKey(0)
    k_params, k_enc, k_tgt = jax.random.split(key, 3)

    params = init_params(k_params, num_classes, d_model, d_ff, num_layers, pad_id)
    encoder_outputs = jax.random.normal(k_enc, (B, S, d_model), jnp.float32)
    # targets contain no eos_id so the eos-filter in the reference preserves the shape
    targets = jax.random.randint(k_tgt, (B, T), 3, num_classes).astype(jnp.int32)
    targets = targets.at[:, 0].set(sos_id)
    target_lengths = jnp.array([T, T - 2], jnp.int32)
    encoder_output_lengths = jnp.array([S, S - 4], jnp.int32)

    out = speech_transformer_decoder_forward(
        params, encoder_outputs, targets,
        encoder_output_lengths, target_lengths,
        num_heads=num_heads, d_model=d_model)
    out = jax.block_until_ready(out)

    assert out.shape == (B, T, num_classes), out.shape
    assert bool(jnp.all(jnp.isfinite(out)))
    # rows of log-softmax must sum (in prob space) to ~1
    assert bool(jnp.allclose(jnp.sum(jnp.exp(out), axis=-1), 1.0, atol=1e-4))
    print("KERNEL_OK")
</pallas_src>

<mosaic_0001>
module attributes {stable_mosaic.version = 11 : i64} {
  func.func @_self_attn_addnorm_kernel(%arg0: i32, %arg1: memref<2xi32, #tpu.memory_space<smem>>, %arg2: memref<1x8x128xf32, #tpu.memory_space<vmem>>, %arg3: memref<128x384xbf16, #tpu.memory_space<vmem>>, %arg4: memref<1x384xf32, #tpu.memory_space<vmem>>, %arg5: memref<1x128xf32, #tpu.memory_space<vmem>>, %arg6: memref<1x128xf32, #tpu.memory_space<vmem>>, %arg7: memref<1x8x128xf32, #tpu.memory_space<vmem>>) attributes {dimension_semantics = [#tpu.dimension_semantics<parallel>], iteration_bounds = array<i64: 2>, scalar_prefetch = 1 : i64, scratch_operands = 0 : i64, tpu.core_type = #tpu.core_type<tc>, window_params = [{transform_indices = @transform_0, window_bounds = array<i64: 1, 8, 128>}, {pipeline_mode = #tpu.pipeline_mode<synchronous>, transform_indices = @transform_1, window_bounds = array<i64: 128, 384>}, {pipeline_mode = #tpu.pipeline_mode<synchronous>, transform_indices = @transform_2, window_bounds = array<i64: 1, 384>}, {pipeline_mode = #tpu.pipeline_mode<synchronous>, transform_indices = @transform_3, window_bounds = array<i64: 1, 128>}, {pipeline_mode = #tpu.pipeline_mode<synchronous>, transform_indices = @transform_4, window_bounds = array<i64: 1, 128>}, {transform_indices = @transform_5, window_bounds = array<i64: 1, 8, 128>}]} {
    %c0 = arith.constant 0 : index
    %c0_0 = arith.constant 0 : index
    %c0_1 = arith.constant 0 : index
    %0 = vector.load %arg2[%c0, %c0_0, %c0_1] : memref<1x8x128xf32, #tpu.memory_space<vmem>>, vector<1x8x128xf32>
    %1 = vector.shape_cast %0 : vector<1x8x128xf32> to vector<8x128xf32>
    %2 = arith.truncf %1 : vector<8x128xf32> to vector<8x128xbf16>
    %c0_2 = arith.constant 0 : index
    %c0_3 = arith.constant 0 : index
    %3 = vector.load %arg3[%c0_2, %c0_3] : memref<128x384xbf16, #tpu.memory_space<vmem>>, vector<128x384xbf16>
    %cst = arith.constant dense<0.000000e+00> : vector<8x384xf32>
    %4 = tpu.matmul %2, %3, %cst {dimension_numbers = #tpu.dot_dimension_numbers<[1], [0], [0], [1], [0, 0, 1, 1], [], []>} : vector<8x128xbf16>, vector<128x384xbf16>, vector<8x384xf32> -> vector<8x384xf32>
    %c0_4 = arith.constant 0 : index
    %c0_5 = arith.constant 0 : index
    %5 = vector.load %arg4[%c0_4, %c0_5] : memref<1x384xf32, #tpu.memory_space<vmem>>, vector<1x384xf32>
    %6 = vector.broadcast %5 : vector<1x384xf32> to vector<8x384xf32>
    %7 = arith.addf %4, %6 : vector<8x384xf32>
    %8 = vector.extract_strided_slice %7 {offsets = [0, 0], sizes = [8, 128], strides = [1, 1]} : vector<8x384xf32> to vector<8x128xf32>
    %9 = vector.shape_cast %8 : vector<8x128xf32> to vector<8x2x64xf32>
    %10 = arith.truncf %9 : vector<8x2x64xf32> to vector<8x2x64xbf16>
    %11 = vector.extract_strided_slice %7 {offsets = [0, 128], sizes = [8, 128], strides = [1, 1]} : vector<8x384xf32> to vector<8x128xf32>
    %12 = vector.shape_cast %11 : vector<8x128xf32> to vector<8x2x64xf32>
    %13 = arith.truncf %12 : vector<8x2x64xf32> to vector<8x2x64xbf16>
    %14 = vector.extract_strided_slice %7 {offsets = [0, 256], sizes = [8, 128], strides = [1, 1]} : vector<8x384xf32> to vector<8x128xf32>
    %15 = vector.shape_cast %14 : vector<8x128xf32> to vector<8x2x64xf32>
    %16 = arith.truncf %15 : vector<8x2x64xf32> to vector<8x2x64xbf16>
    %17 = tpu.iota {dimensions = array<i32: 1>} : vector<8x8xi32>
    %18 = tpu.iota {dimensions = array<i32: 0>} : vector<8x8xi32>
    %19 = arith.index_cast %arg0 : i32 to index
    %20 = memref.load %arg1[%19] : memref<2xi32, #tpu.memory_space<smem>>
    %21 = vector.broadcast %20 : i32 to vector<8x8xi32>
    %22 = arith.cmpi sge, %17, %21 : vector<8x8xi32>
    %23 = arith.cmpi sgt, %17, %18 : vector<8x8xi32>
    %24 = arith.ori %22, %23 : vector<8x8xi1>
    %cst_6 = arith.constant -1.000000e+09 : f32
    %cst_7 = arith.constant 0.000000e+00 : f32
    %25 = vector.broadcast %cst_6 : f32 to vector<8x8xf32>
    %26 = vector.broadcast %cst_7 : f32 to vector<8x8xf32>
    %27 = arith.select %24, %25, %26 : vector<8x8xi1>, vector<8x8xf32>
    "tpu.trace_start"() <{level = 10 : i32, message = "qhd,khd->hqk"}> : () -> ()
    %cst_8 = arith.constant dense<0.000000e+00> : vector<2x8x8xf32>
    %28 = tpu.matmul %10, %13, %cst_8 {dimension_numbers = #tpu.dot_dimension_numbers<[2], [2], [0], [0], [0, 1, 0, 0, 1, 0], [1], [1]>} : vector<8x2x64xbf16>, vector<8x2x64xbf16>, vector<2x8x8xf32> -> vector<2x8x8xf32>
    "tpu.trace_stop"() : () -> ()
    %cst_9 = arith.constant 1.250000e-01 : f32
    %29 = vector.broadcast %cst_9 : f32 to vector<2x8x8xf32>
    %30 = arith.mulf %28, %29 : vector<2x8x8xf32>
    %31 = vector.shape_cast %27 : vector<8x8xf32> to vector<1x8x8xf32>
    %32 = vector.broadcast %31 : vector<1x8x8xf32> to vector<2x8x8xf32>
    %33 = arith.addf %30, %32 : vector<2x8x8xf32>
    %cst_10 = arith.constant dense<0xFF800000> : vector<2x8xf32>
    %34 = vector.multi_reduction <maximumf>, %33, %cst_10 [2] : vector<2x8x8xf32> to vector<2x8xf32>
    %35 = vector.shape_cast %34 : vector<2x8xf32> to vector<2x8x1xf32>
    %36 = vector.broadcast %35 : vector<2x8x1xf32> to vector<2x8x8xf32>
    %37 = arith.subf %33, %36 : vector<2x8x8xf32>
    %38 = math.exp %37 : vector<2x8x8xf32>
    %cst_11 = arith.constant dense<0.000000e+00> : vector<2x8xf32>
    %39 = vector.multi_reduction <add>, %38, %cst_11 [2] : vector<2x8x8xf32> to vector<2x8xf32>
    %40 = vector.shape_cast %39 : vector<2x8xf32> to vector<2x8x1xf32>
    %41 = tpu.reciprocal %40 {approx = true} : vector<2x8x1xf32> -> vector<2x8x1xf32>
    %42 = vector.broadcast %41 : vector<2x8x1xf32> to vector<2x8x8xf32>
    %43 = arith.mulf %38, %42 : vector<2x8x8xf32>
    %44 = arith.truncf %43 : vector<2x8x8xf32> to vector<2x8x8xbf16>
    "tpu.trace_start"() <{level = 10 : i32, message = "hqk,khd->qhd"}> : () -> ()
    %cst_12 = arith.constant dense<0.000000e+00> : vector<2x64x8xf32>
    %45 = tpu.matmul %16, %44, %cst_12 {dimension_numbers = #tpu.dot_dimension_numbers<[0], [2], [2], [1], [0, 1, 0, 2, 1, 1], [1], [0]>} : vector<8x2x64xbf16>, vector<2x8x8xbf16>, vector<2x64x8xf32> -> vector<2x64x8xf32>
    %46 = tpu.transpose %45, [2, 0, 1] : vector<2x64x8xf32> -> vector<8x2x64xf32>
    "tpu.trace_stop"() : () -> ()
    %47 = vector.shape_cast %46 : vector<8x2x64xf32> to vector<8x128xf32>
    %48 = arith.addf %47, %1 : vector<8x128xf32>
    %c0_13 = arith.constant 0 : index
    %c0_14 = arith.constant 0 : index
    %49 = vector.load %arg5[%c0_13, %c0_14] : memref<1x128xf32, #tpu.memory_space<vmem>>, vector<1x128xf32>
    %c0_15 = arith.constant 0 : index
    %c0_16 = arith.constant 0 : index
    %50 = vector.load %arg6[%c0_15, %c0_16] : memref<1x128xf32, #tpu.memory_space<vmem>>, vector<1x128xf32>
    %cst_17 = arith.constant dense<0.000000e+00> : vector<8xf32>
    %51 = vector.multi_reduction <add>, %48, %cst_17 [1] : vector<8x128xf32> to vector<8xf32>
    %52 = vector.shape_cast %51 : vector<8xf32> to vector<8x1xf32>
    %cst_18 = arith.constant 1.280000e+02 : f32
    %53 = vector.broadcast %cst_18 : f32 to vector<8x1xf32>
    %54 = arith.divf %52, %53 : vector<8x1xf32>
    %55 = vector.broadcast %54 : vector<8x1xf32> to vector<8x128xf32>
    %56 = arith.subf %48, %55 : vector<8x128xf32>
    %57 = arith.mulf %56, %56 : vector<8x128xf32>
    %cst_19 = arith.constant dense<0.000000e+00> : vector<8xf32>
    %58 = vector.multi_reduction <add>, %57, %cst_19 [1] : vector<8x128xf32> to vector<8xf32>
    %59 = vector.shape_cast %58 : vector<8xf32> to vector<8x1xf32>
    %cst_20 = arith.constant 1.280000e+02 : f32
    %60 = vector.broadcast %cst_20 : f32 to vector<8x1xf32>
    %61 = arith.divf %59, %60 : vector<8x1xf32>
    %62 = vector.broadcast %54 : vector<8x1xf32> to vector<8x128xf32>
    %63 = arith.subf %48, %62 : vector<8x128xf32>
    %cst_21 = arith.constant 9.99999974E-6 : f32
    %64 = vector.broadcast %cst_21 : f32 to vector<8x1xf32>
    %65 = arith.addf %61, %64 : vector<8x1xf32>
    %66 = math.rsqrt %65 : vector<8x1xf32>
    %67 = vector.broadcast %66 : vector<8x1xf32> to vector<8x128xf32>
    %68 = arith.mulf %63, %67 : vector<8x128xf32>
    %69 = vector.broadcast %49 : vector<1x128xf32> to vector<8x128xf32>
    %70 = arith.mulf %68, %69 : vector<8x128xf32>
    %71 = vector.broadcast %50 : vector<1x128xf32> to vector<8x128xf32>
    %72 = arith.addf %70, %71 : vector<8x128xf32>
    %c0_22 = arith.constant 0 : index
    %c0_23 = arith.constant 0 : index
    %c0_24 = arith.constant 0 : index
    %73 = vector.load %arg7[%c0_22, %c0_23, %c0_24] : memref<1x8x128xf32, #tpu.memory_space<vmem>>, vector<1x8x128xf32>
    %74 = vector.shape_cast %73 : vector<1x8x128xf32> to vector<8x128xf32>
    %75 = vector.shape_cast %72 : vector<8x128xf32> to vector<1x8x128xf32>
    tpu.vector_store %arg7[%c0_22, %c0_23, %c0_24], %75 {strides = array<i32>} : memref<1x8x128xf32, #tpu.memory_space<vmem>>, vector<1x8x128xf32>,
    return
  }
  func.func @transform_0(%arg0: i32, %arg1: memref<2xi32, #tpu.memory_space<smem>>) -> (i32, i32, i32) {
    %c0_i32 = arith.constant 0 : i32
    %c0_i32_0 = arith.constant 0 : i32
    %c0_i32_1 = arith.constant 0 : i32
    return %arg0, %c0_i32, %c0_i32_0 : i32, i32, i32
  }
  func.func @transform_1(%arg0: i32, %arg1: memref<2xi32, #tpu.memory_space<smem>>) -> (i32, i32) {
    %c0_i32 = arith.constant 0 : i32
    %c0_i32_0 = arith.constant 0 : i32
    %c0_i32_1 = arith.constant 0 : i32
    return %c0_i32, %c0_i32_0 : i32, i32
  }
  func.func @transform_2(%arg0: i32, %arg1: memref<2xi32, #tpu.memory_space<smem>>) -> (i32, i32) {
    %c0_i32 = arith.constant 0 : i32
    %c0_i32_0 = arith.constant 0 : i32
    %c0_i32_1 = arith.constant 0 : i32
    return %c0_i32, %c0_i32_0 : i32, i32
  }
  func.func @transform_3(%arg0: i32, %arg1: memref<2xi32, #tpu.memory_space<smem>>) -> (i32, i32) {
    %c0_i32 = arith.constant 0 : i32
    %c0_i32_0 = arith.constant 0 : i32
    %c0_i32_1 = arith.constant 0 : i32
    return %c0_i32, %c0_i32_0 : i32, i32
  }
  func.func @transform_4(%arg0: i32, %arg1: memref<2xi32, #tpu.memory_space<smem>>) -> (i32, i32) {
    %c0_i32 = arith.constant 0 : i32
    %c0_i32_0 = arith.constant 0 : i32
    %c0_i32_1 = arith.constant 0 : i32
    return %c0_i32, %c0_i32_0 : i32, i32
  }
  func.func @transform_5(%arg0: i32, %arg1: memref<2xi32, #tpu.memory_space<smem>>) -> (i32, i32, i32) {
    %c0_i32 = arith.constant 0 : i32
    %c0_i32_0 = arith.constant 0 : i32
    %c0_i32_1 = arith.constant 0 : i32
    return %arg0, %c0_i32, %c0_i32_0 : i32, i32, i32
  }
}

</mosaic_0001>

<bundles_post_ra>
// kernel: tpu_custom_call.1
= control target key start
LH: loop header
LB: loop body
LE: loop exit
PB: predicated region body
PF: predicated region fallthrough
CT: control target
= control target key end

     0   :  { %s6286_s21 = smov [#allocation3]   ;;  %s7684_s0 = inlined_call_operand.hbm [shape: s32[2], index: 0, kind: input, shape index: {}]   ;;  %s7685_s1 = inlined_call_operand.hbm [shape: f32[2,8,128], index: 1, kind: input, shape index: {}]   ;;  %s7686_s2 = inlined_call_operand.hbm [shape: bf16[128,384], index: 2, kind: input, shape index: {}]   ;;  %s7687_s3 = inlined_call_operand.vmem [shape: f32[1,384], index: 3, kind: input, shape index: {}]   ;;  %s7688_s4 = inlined_call_operand.vmem [shape: f32[1,128], index: 4, kind: input, shape index: {}]   ;;  %s7689_s5 = inlined_call_operand.vmem [shape: f32[1,128], index: 5, kind: input, shape index: {}]   ;;  %s7690_s6 = inlined_call_operand.hbm [shape: f32[2,8,128], index: 6, kind: output, shape index: {}]  }
   0x1   :  { %12 = dma.hbm_to_smem %s7684_s0, 16, %s6286_s21, [#allocation2] }
   0x2   :  { %6256 = dma.done.wait [#allocation2], 16 }
   0x3   :  { %6257 = vsyncadd [#allocation2], 4294967280 }
   0x4   :  { %14 = sfence }
   0x5   :  { %15 = vsyncpa [#allocation5], 0 }
   0x6   :  { %17 = vsyncpa [#allocation5 + $0x1], 0 }
   0x7   :  { %18 = vsyncpa [#allocation8], 0 }
   0x8   :  { %19 = vsyncpa [#allocation6], 0 }
   0x9   :  { %21 = vsyncpa [#allocation6 + $0x1], 0  ;;  %s6336_s24 = smov 0   ;;  %s6338_s25 = smov 0  }
   0xa   :  { %s6340_s26 = smov 0   ;;  %s6342_s27 = smov 0  }
   0xb LB: > { %s6357_s0 = sadd.s32 4294967295, %s6284_s27   ;;  %s5892_s28 = sadd.s32 4294967294, %s6284_s27   ;;  %s6284_s27 = sphi %s6342_s27, %s7751_s27   ;;  %s6280_s26 = sphi %s6340_s26, %s7750_s26   ;;  %s6276_s25 = sphi %s6338_s25, %s7749_s25   ;;  %s6272_s24 = sphi %s6336_s24, %s7748_s24  }
   0xc   : > { %p47_p0 = scmp.ne.s32.totalorder %s6276_s25, %s6272_s24  ;;  %p7691_p1 = scmp.eq.s32.totalorder %s6357_s0, 0 }
   0xd   : > { %p161_p3 = scmp.eq.s32.totalorder %s5892_s28, 1  ;;  %p5893_p5 = scmp.ge.s32.totalorder %s6284_s27, 1 }
   0xe   : > { %p6366_p4 = por %p7691_p1, %p47_p0  ;;  %p168_p7 = scmp.lt.s32.totalorder %s6284_s27, 3 }
   0xf   : > { %p6371_p6 = por %p161_p3, %p47_p0  ;;  %s6287_s8 = smov [#allocation7]  }
  0x10   : > { %s7705_s29 = scalar_select %p6366_p4, 1, 0 }
  0x11   : > { %s7706_s30 = scalar_select %p6371_p6, 1, 0 }
  0x12   : > { %p6376_p8 = pnand %p5893_p5, %p168_p7  ;;  %s180_s9 = sshll.u32 %s6287_s8, 4  ;;  %s181_s9 = int_to_ptr.vmem [resolvable:$true] %s180_s9 }
  0x13   : > { %s6390_s11 = sadd.s32 1, %s6284_s27   ;;  %s34_s12 = sadd.s32 1, %s6280_s26 }
  0x14   : > { %s7707_s7 = scalar_select %p6376_p8, 1, 0 }
  0x15   : > { %p6051_p9 = pneg %p6376_p8  ;;  %s31_s13 = ssub.s32 %s6284_s27, %s6390_s11 }
  0x16   : > { %s6171_s14 = scalar_lea.vmem %s181_s9, 3072  ;;  %p6179_p5 = scmp.lt.s32.totalorder %s181_s9, %s181_s9 }
  0x17   : > { %p6385_p11 = pnand %p6051_p9, %p7691_p1  ;;  %p6172_p13 = scmp.ne.s32.totalorder %s181_s9, %s6171_s14 }
  0x18   : > { %p6180_p7 = scmp.lt.s32.totalorder %s6171_s14, %s6171_s14 }
  0x19   : > { %p6162_p12 = pneg %p6385_p11 }
  0x1a   : > { %p6181_p10 = por %p6180_p7, %p6179_p5 }
  0x1b   : > { %p6174_p0 = pnand %p6172_p13, %p6162_p12 }
  0x1d   : > { %p6175_p3 = pneg %p6174_p0 }
  0x1f   : > { %p6182_p2 = pnand %p6181_p10, %p6175_p3 }
  0x21   : > { %6185 = shalt.err (!%p6182_p2)
}
  0x22   : > { %s6288_s15 = smov 192   ;;  %s6289_s16 = smov 12  }
  0x23   : > { %6054 = dma.hbm_to_vmem [thread:$0]  (!%p6385_p11), %s7686_s2, 3072, %s181_s9, [#allocation8], %s6288_s15, %s6288_s15, %s6289_s16  }
  0x24   : > { %p32_p9 = scmp.eq.s32.totalorder %s31_s13, 0  ;;  %p41_p12 = scmp.ne.s32.totalorder %s6280_s26, %s6276_s25 }
  0x25   : > { %p42_p10 = scmp.eq.s32.totalorder %s6284_s27, 0  ;;  %p6064_p2 = scmp.lt.s32.totalorder %s6284_s27, 2 }
  0x26   : > { %s6407_s19 = scalar_select %p32_p9, %s6280_s26, %s34_s12  }
  0x27   : > { %p43_p13 = por %p42_p10, %p41_p12  ;;  %p7709_p0 = scmp.eq.s32.totalorder %s6357_s0, 1 }
  0x28   : > { %s203_s21 = sand.u32 1, %s6280_s26   ;;  %s5897_s22 = sshll.u32 %s6284_s27, 7 }
  0x29   : > { %p6411_p3 = por %p7709_p0, %p41_p12  ;;  %s5896_s23 = sshll.u32 %s203_s21, 3 }
  0x2a   : > { %s6420_s10 = scalar_lea.hbm %s7685_s1, %s5897_s22  ;;  %s207_s9 = scalar_lea.vmem [#allocation4], %s5896_s23 }
  0x2b   : > { %s7710_s20 = scalar_select %p6411_p3, 1, 0 }
  0x2c   : > { %s214_s12 = sshll.u32 %s207_s9, 4  ;;  %p6422_p11 = pnand %p6064_p2, %p43_p13  ;;  %s215_s12 = int_to_ptr.vmem [resolvable:$true] %s214_s12 }
  0x2d   : > { %s204_s14 = scalar_lea.sflag [#allocation5], %s203_s21  ;;  %s6186_s15 = scalar_lea.hbm %s6420_s10, 128 }
  0x2e   : > { %p6187_p5 = scmp.ne.s32.totalorder %s6420_s10, %s6186_s15  ;;  %p6188_p7 = pneg %p6422_p11 }
  0x2f   : > { %s6191_s18 = scalar_lea.hbm %s7685_s1, 256  ;;  %p6192_p10 = scmp.lt.s32.totalorder %s6420_s10, %s7685_s1 }
  0x30   : > { %p6189_p9 = pnand %p6188_p7, %p6187_p5  ;;  %p6193_p2 = scmp.lt.s32.totalorder %s6191_s18, %s6186_s15 }
  0x32   : > { %p6190_p12 = pneg %p6189_p9  ;;  %p6194_p13 = por %p6193_p2, %p6192_p10 }
  0x34   : > { %p6195_p0 = pnand %p6194_p13, %p6190_p12 }
  0x36   : > { %6198 = shalt.err (!%p6195_p0)
}
  0x37   : > { %s6199_s28 = scalar_lea.vmem %s215_s12, 128  ;;  %s6290_s21 = smov [#allocation4]  }
  0x38   : > { %p6200_p1 = scmp.ne.s32.totalorder %s215_s12, %s6199_s28  ;;  %s6204_s8 = sshll.u32 %s6290_s21, 4  ;;  %s6205_s8 = int_to_ptr.vmem [resolvable:$false] %s6204_s8 }
  0x39   : > { %s6206_s9 = scalar_lea.vmem %s6205_s8, 256  ;;  %p6207_p5 = scmp.lt.s32.totalorder %s215_s12, %s6205_s8 }
  0x3a   : > { %p6202_p6 = pnand %p6200_p1, %p6188_p7  ;;  %p6208_p9 = scmp.lt.s32.totalorder %s6206_s9, %s6199_s28 }
  0x3c   : > { %p6203_p3 = pneg %p6202_p6  ;;  %p6209_p4 = por %p6208_p9, %p6207_p5 }
  0x3e   : > { %p6210_p8 = pnand %p6209_p4, %p6203_p3 }
  0x40   : > { %6213 = shalt.err (!%p6210_p8)
}
  0x41   : > { %6058 = dma.hbm_to_vmem [thread:$0]  (!%p6422_p11), %s6420_s10, 128, %s215_s12, %s204_s14  }
  0x42   : > { %p7712_p12 = scmp.ne.s32.totalorder %s7707_s7, 0 }
  0x44   : > { %223 = sbr.rel (%p7712_p12) target bundleno = 2226 (0x8b2), region = 40 }
  0x49   : > { %s6443_s15 = sand.u32 1, %s6276_s25   ;;  %p7713_p1 = scmp.ne.s32.totalorder %s7705_s29, 0 }
  0x4a   : > { %s5899_s16 = sshll.u32 %s6443_s15, 3  ;;  %s226_s17 = scalar_lea.sflag [#allocation5], %s6443_s15 }
  0x4b   : > { %s6449_s18 = scalar_lea.vmem [#allocation4], %s5899_s16 }
  0x4c   : > { %6259 = dma.done.wait (%p7713_p1), %s226_s17, 128  }
  0x4d   : > { %6261 = vsyncadd (%p7713_p1), %s226_s17, 4294967168  ;;  %p7714_p4 = scmp.eq.s32.totalorder %s6357_s0, 0 }
  0x4f   : > { %6263 = dma.done.wait (%p7714_p4), [#allocation8], 3072   ;;  %p7715_p6 = pmov %p7714_p4 }
  0x50   : > { %v7698_v0 = vmov 0   ;;  %v6109_v1 = vld [vmem:[#allocation7 + $0xac] ss:$12 sps:$4 sm:$0xff]   ;;  %v6111_v2 = vld [vmem:[#allocation7 + $0xa8] ss:$12 sps:$4 sm:$0xff]   ;;  %v7696_v19 = vmov 0.0   ;;  %v7695_v20 = vlaneseq }
  0x51   : > { %6265 = vsyncadd (%p7715_p6), [#allocation8], 4294964224  ;;  %472 = vmatprep.mubr.bf16.mxu0 %v7698_v0  ;;  %440 = vmatprep.subr.bf16.mxu0 %v6109_v1  ;;  %v6112_v3 = vld [vmem:[#allocation7 + $0x94] ss:$12 sps:$4 sm:$0xff]   ;;  %v6114_v4 = vld [vmem:[#allocation7 + $0x90] ss:$12 sps:$4 sm:$0xff]  }
  0x52   : > { %441 = vmatpush1.bf16.msra.mxu0 %v6111_v2  ;;  %v6115_v5 = vld [vmem:[#allocation7 + $0x7c] ss:$12 sps:$4 sm:$0xff]   ;;  %v6117_v6 = vld [vmem:[#allocation7 + $0x78] ss:$12 sps:$4 sm:$0xff]   ;;  %v6120_v8 = vld [vmem:[#allocation7 + $0x60] ss:$12 sps:$4 sm:$0xff]   ;;  %5977 = vmatprep.subr.bf16.mxu1 %v7696_v19 }
  0x53   : > { %442 = vmatprep.subr.bf16.mxu0 %v6112_v3  ;;  %v6118_v7 = vld [vmem:[#allocation7 + $0x64] ss:$12 sps:$4 sm:$0xff]   ;;  %v6121_v9 = vld [vmem:[#allocation7 + $0x4c] ss:$12 sps:$4 sm:$0xff]   ;;  %v6123_v10 = vld [vmem:[#allocation7 + $0x48] ss:$12 sps:$4 sm:$0xff]  }
  0x54   : > { %v6124_v11 = vld [vmem:[#allocation7 + $0x34] ss:$12 sps:$4 sm:$0xff]   ;;  %v6126_v12 = vld [vmem:[#allocation7 + $0x30] ss:$12 sps:$4 sm:$0xff]   ;;  %v6129_v14 = vld [vmem:[#allocation7 + $0x18] ss:$12 sps:$4 sm:$0xff]  }
  0x55   : > { %v6127_v13 = vld [vmem:[#allocation7 + $0x1c] ss:$12 sps:$4 sm:$0xff]   ;;  %v6130_v15 = vld [vmem:[#allocation7 + $0x4] ss:$12 sps:$4 sm:$0xff]   ;;  %v6132_v16 = vld [vmem:[#allocation7] ss:$12 sps:$4 sm:$0xff]  }
  0x56   : > { %443 = vmatpush1.bf16.msra.mxu0 %v6114_v4  ;;  %v261_v17 = vld [vmem:[%s6449_s18] sm:$0xff]  ;;  %v6467_v21 = vshrl.u32 %v7695_v20, 7  ;;  %s6293_s10 = smov 64   ;;  %v6135_v35 = vld [vmem:[#allocation7 + $0x80] ss:$12 sps:$4 sm:$0xff]   ;;  %vm6296_vm0 = vmmov 0  }
  0x57   : > { %444 = vmatprep.subr.bf16.mxu0 %v6115_v5  ;;  %v6461_v18 = vpack.c.bf16 %v261_v17, %v261_v17  ;;  %v6473_v23 = vld [vmem:[%s7687_s3] sm:$0x7]  ;;  %v6134_v34 = vld [vmem:[#allocation7 + $0x98] ss:$12 sps:$4 sm:$0xff]   ;;  %v6136_v36 = vld [vmem:[#allocation7 + $0x68] ss:$12 sps:$4 sm:$0xff]   ;;  %5993 = vmatprep.mubr.msk.bf16.mxu1 %vm6296_vm0, %v7696_v19 }
  0x58   : > { %7716 = vst [vmem:[#allocation14_spill] sm:$0xff] %v6467_v21  ;;  %v299_v22 = vsub.s32 0, %v6467_v21  ;;  %v303_v24 = vsub.s32 1, %v6467_v21  ;;  %v6133_v33 = vld [vmem:[#allocation7 + $0xb0] ss:$12 sps:$4 sm:$0xff]   ;;  %vm3067_vm1 = vcmask 523264  }
  0x59   : > { %5978 = vmatpush3.bf16.msra.mxu1 %v6133_v33  ;;  %v6137_v37 = vld [vmem:[#allocation7 + $0x50] ss:$12 sps:$4 sm:$0xff]   ;;  %v6138_v38 = vld [vmem:[#allocation7 + $0x38] ss:$12 sps:$4 sm:$0xff]   ;;  %v6294_v39 = vmov 1983009808  }
  0x5a   : > { %445 = vmatpush1.bf16.msra.mxu0 %v6117_v6  ;;  %v300_v25 = vrot.slane %v6473_v23, %v299_v22  ;;  %v304_v26 = vrot.slane %v6473_v23, %v303_v24  ;;  %5979 = vmatprep.subr.bf16.mxu1 %v7696_v19  ;;  %v527_v40 = vunpack.c.l.s4 %v6294_v39  ;;  %v6139_v41 = vld [vmem:[#allocation7 + $0x20] ss:$12 sps:$4 sm:$0xff]   ;;  %v6295_v43 = vmov 1934713408   ;;  %v6140_v45 = vld [vmem:[#allocation7 + $0x8] ss:$12 sps:$4 sm:$0xff]  }
  0x5b   : > { %446 = vmatprep.subr.bf16.mxu0 %v6118_v7  ;;  %v558_v44 = vunpack.c.l.s4 %v6295_v43  ;;  %s759_s12 = sld [smem:[#allocation3 + %s6357_s0]]  ;;  %vm3158_vm5 = vcmask 64512   ;;  %s5945_s28 = sshll.u32 %s6357_s0, 7 }
  0x5c   : > { %v528_v42 = vunpack.c.0.s8 %v527_v40  ;;  %s259_s21 = scalar_lea.vmem [#allocation9], %s5899_s16  ;;  %s5799_s29 = scalar_lea.sflag [#allocation6], %s6443_s15 }
  0x5d   : > { %5980 = vmatpush3.bf16.msra.mxu1 %v6134_v34  ;;  %v559_v47 = vunpack.c.0.s8 %v558_v44  ;;  %s5812_s8 = sshll.u32 %s259_s21, 4  ;;  %p7745_p3 = scmp.ne.s32.totalorder %s7710_s20, 0  ;;  %s5813_s8 = int_to_ptr.vmem [resolvable:$true] %s5812_s8 }
  0x5e   : > { %447 = vmatpush1.bf16.msra.mxu0 %v6120_v8  ;;  %5981 = vmatprep.subr.bf16.mxu1 %v7696_v19  ;;  %v6491_v46 = vsub.s32 %v528_v42, %v6467_v21  ;;  %s6214_s7 = scalar_lea.vmem %s5813_s8, 128 }
  0x5f   : > { %448 = vmatprep.subr.bf16.mxu0 %v6121_v9  ;;  %v6499_v53 = vsub.s32 %v559_v47, %v6467_v21  ;;  %p6215_p8 = scmp.ne.s32.totalorder %s5813_s8, %s6214_s7 }
  0x61   : > { %5982 = vmatpush3.bf16.msra.mxu1 %v6135_v35  ;;  %p6216_p11 = pnand %p6215_p8, %p7745_p3 }
  0x62   : > { %449 = vmatpush1.bf16.msra.mxu0 %v6123_v10  ;;  %5983 = vmatprep.subr.bf16.mxu1 %v7696_v19 }
  0x63   : > { %450 = vmatprep.subr.bf16.mxu0 %v6124_v11  ;;  %p6217_p7 = pneg %p6216_p11 }
  0x65   : > { %5984 = vmatpush3.bf16.msra.mxu1 %v6136_v36 }
  0x66   : > { %451 = vmatpush1.bf16.msra.mxu0 %v6126_v12  ;;  %5985 = vmatprep.subr.bf16.mxu1 %v7696_v19 }
  0x67   : > { %452 = vmatprep.subr.bf16.mxu0 %v6127_v13 }
  0x69   : > { %5986 = vmatpush3.bf16.msra.mxu1 %v6137_v37 }
  0x6a   : > { %453 = vmatpush1.bf16.msra.mxu0 %v6129_v14  ;;  %5987 = vmatprep.subr.bf16.mxu1 %v7696_v19 }
  0x6b   : > { %454 = vmatprep.subr.bf16.mxu0 %v6130_v15 }
  0x6d   : > { %5988 = vmatpush3.bf16.msra.mxu1 %v6138_v38 }
  0x6e   : > { %455 = vmatpush1.bf16.msra.mxu0 %v6132_v16  ;;  %5989 = vmatprep.subr.bf16.mxu1 %v7696_v19 }
  0x6f   : > { %5997 = vmatprep.subr.bf16.mxu0 %v7696_v19 }
  0x71   : > { %473 = vmatmul.mubr.bf16.vlgmr.msra.gmra.mxu0 %v6461_v18  ;;  %5990 = vmatpush3.bf16.msra.mxu1 %v6139_v41 }
  0x72   : > { %5991 = vmatprep.subr.bf16.mxu1 %v7696_v19  ;;  %6005 = vmatprep.mubr.msk.bf16.mxu0 %vm6296_vm0, %v7696_v19 }
  0x75   : > { %5992 = vmatpush3.bf16.msra.mxu1 %v6140_v45 }
  0x76   : > { %6009 = vmatprep.subr.bf16.mxu1 %v7696_v19 }
  0x78   : > { %5994 = vmatmul.mubr.bf16.vlgmr.msra.gmra.mxu1 %v6461_v18 }
  0x79   : > { %6017 = vmatprep.mubr.msk.bf16.mxu1 %vm6296_vm0, %v7696_v19 }
 0x131   : > { %v474_v27 = vpop.f32.mrf.mxu0 }
 0x132   : > { %v6478_v28 = vadd.f32 %v474_v27, %v300_v25 }
 0x133   : > { %v476_v29 = vpop.f32.mrf.mxu0 }
 0x134   : > { %v477_v30 = vadd.f32 %v476_v29, %v304_v26  ;;  %522 = vrot.lane.b32.xlu1 %v6478_v28, %s6293_s10 }
 0x135   : > { %v478_v31 = vpop.f32.mrf.mxu0 }
 0x136   : > { %600 = vrot.lane.b32.xlu0 %v477_v30, %s6293_s10  ;;  %v610_v50 = vrot.slane %v477_v30, %v6491_v46  ;;  %v603_v52 = vcombine.high %v477_v30, %v7696_v19 }
 0x137   : > { %v479_v32 = vpop.f32.mrf.mxu0 }
 0x138   : > { %v617_v59 = vrot.slane %v603_v52, %v6491_v46 }
 0x1a6   : > { %v6515_v13 = vpop.permute.xlu1 %522 }
 0x1a8   : > { %v601_v48 = vpop.permute.xlu0 %600 }
 0x1a9   : > { %v618_v49 = vcombine.high %v601_v48, %v7696_v19  ;;  %v625_v51 = vrot.slane %v601_v48, %v6491_v46 }
 0x1ab   : > { %v633_v54 = vcombine.low %v610_v50, %v625_v51  ;;  %v634_v55 = vcombine.high %v610_v50, %v625_v51  ;;  %v632_v56 = vrot.slane %v618_v49, %v6491_v46 }
 0x1ad   : > { %v641_v57 = vrot.slane %v633_v54, %v6499_v53  ;;  %v648_v58 = vrot.slane %v634_v55, %v6499_v53  ;;  %v649_v62 = vcombine.low %v617_v59, %v632_v56  ;;  %v650_v5 = vcombine.high %v617_v59, %v632_v56 }
 0x1af   : > { %v669_v60 = vpack.c.bf16 %v641_v57, %v641_v57  ;;  %v671_v61 = vpack.c.bf16 %v648_v58, %v648_v58  ;;  %v657_v63 = vrot.slane %v649_v62, %v6499_v53  ;;  %v665_v2 = vcombine.high %v641_v57, %v7696_v19 }
 0x1b0   : > { %v664_v6 = vrot.slane %v650_v5, %v6499_v53  ;;  %v666_v8 = vcombine.high %v648_v58, %v7696_v19 }
 0x1b1   : > { %819 = vxpose.xlu0.c.b16.start.end [1/1] (short) (narrow) %v669_v60, 64  ;;  %851 = vxpose.xlu1.c.b16.start.end [1/1] (short) (narrow) %v671_v61, 64  ;;  %v667_v1 = vcombine.high %v657_v63, %v7696_v19  ;;  %v670_v4 = vpack.c.bf16 %v665_v2, %v665_v2  ;;  %v673_v11 = vpack.c.bf16 %v657_v63, %v657_v63 }
 0x1b2   : > { %v668_v7 = vcombine.high %v664_v6, %v7696_v19  ;;  %v672_v10 = vpack.c.bf16 %v666_v8, %v666_v8  ;;  %v675_v12 = vpack.c.bf16 %v664_v6, %v664_v6 }
 0x1b3   : > { %v674_v3 = vpack.c.bf16 %v667_v1, %v667_v1 }
 0x1b4   : > { %v676_v9 = vpack.c.bf16 %v668_v7, %v668_v7 }
 0x1be   : > { %899 = vxpose.xlu0.c.b16.start.end [1/1] (short) (narrow) %v674_v3, 64  ;;  %835 = vxpose.xlu1.c.b16.start.end [1/1] (short) (narrow) %v670_v4, 64 }
 0x1cb   : > { %931 = vxpose.xlu0.c.b16.start.end [1/1] (short) (narrow) %v676_v9, 64  ;;  %867 = vxpose.xlu1.c.b16.start.end [1/1] (short) (narrow) %v672_v10, 64 }
 0x1d8   : > { %883 = vxpose.xlu1.c.b16.start.end [1/1] (short) (narrow) %v673_v11, 64 }
 0x1e5   : > { %915 = vxpose.xlu1.c.b16.start.end [1/1] (short) (narrow) %v675_v12, 64 }
 0x213   : > { %v859_v14 = vpop.trf.xlu1  ;;  %v827_v18 = vpop.trf.xlu0 }
 0x214   : > { %v951_v52 = vshrl.u32 %v827_v18, 16  ;;  %v959_v56 = vshrl.u32 %v859_v14, 16 }
 0x217   : > { %v6517_v15 = vpop.trf.xlu1  ;;  %v6521_v24 = vpop.trf.xlu0 }
 0x218   : > { %v991_v59 = vshrl.u32 %v6517_v15, 16  ;;  %v983_v60 = vshrl.u32 %v6521_v24, 16 }
 0x21b   : > { %v6519_v16 = vpop.trf.xlu1  ;;  %v6527_v27 = vpop.trf.xlu0 }
 0x21f   : > { %v862_v17 = vpop.trf.xlu1  ;;  %v6531_v30 = vpop.trf.xlu0 }
 0x220   : > { %v1055_v37 = vshrl.u32 %v862_v17, 16 }
 0x223   : > { %v843_v22 = vpop.trf.xlu1  ;;  %v907_v33 = vpop.trf.xlu0 }
 0x224   : > { %v968_v47 = vshrl.u32 %v907_v33, 16  ;;  %v952_v54 = vshrl.u32 %v843_v22, 16  ;;  %v949_v55 = vpack.i.b16 %v843_v22, %v827_v18 }
 0x226   : > { %v953_v1 = vpack.i.b16 %v952_v54, %v951_v52 }
 0x227   : > { %v6523_v25 = vpop.trf.xlu1  ;;  %v908_v35 = vpop.trf.xlu0 }
 0x228   : > { %v6553_v5 = vpack.i.b16 %v6523_v25, %v6521_v24  ;;  %v984_v6 = vshrl.u32 %v6523_v25, 16  ;;  %v1000_v7 = vshrl.u32 %v908_v35, 16 }
 0x22a   : > { %v985_v52 = vpack.i.b16 %v984_v6, %v983_v60 }
 0x22b   : > { %v6525_v26 = vpop.trf.xlu1  ;;  %v6541_v42 = vpop.trf.xlu0 }
 0x22f   : > { %v6529_v29 = vpop.trf.xlu1  ;;  %v6543_v44 = vpop.trf.xlu0 }
 0x233   : > { %v875_v31 = vpop.trf.xlu1  ;;  %v939_v51 = vpop.trf.xlu0 }
 0x234   : > { %v960_v57 = vshrl.u32 %v875_v31, 16  ;;  %v976_v58 = vshrl.u32 %v939_v51, 16  ;;  %v957_v2 = vpack.i.b16 %v875_v31, %v859_v14 }
 0x236   : > { %v961_v10 = vpack.i.b16 %v960_v57, %v959_v56 }
 0x237   : > { %v6533_v32 = vpop.trf.xlu1  ;;  %v940_v9 = vpop.trf.xlu0 }
 0x238   : > { %v989_v18 = vpack.i.b16 %v6533_v32, %v6517_v15  ;;  %v992_v14 = vshrl.u32 %v6533_v32, 16 }
 0x23b   : > { %v6535_v34 = vpop.trf.xlu1  ;;  %v6562_v54 = vpop.trf.xlu0 }
 0x23f   : > { %v878_v36 = vpop.trf.xlu1 }
 0x240   : > { %v6537_v38 = vpack.i.b16 %v878_v36, %v862_v17  ;;  %v1056_v39 = vshrl.u32 %v878_v36, 16 }
 0x242   : > { %v6539_v40 = vpack.i.b16 %v1056_v39, %v1055_v37 }
 0x243   : > { %v891_v41 = vpop.trf.xlu1 }
 0x244   : > { %v965_v48 = vpack.i.b16 %v907_v33, %v891_v41  ;;  %v967_v49 = vshrl.u32 %v891_v41, 16 }
 0x246   : > { %v969_v61 = vpack.i.b16 %v968_v47, %v967_v49  ;;  %v1075_v62 = vcombine.low %v949_v55, %v965_v48  ;;  %v1076_v39 = vcombine.high %v949_v55, %v965_v48  ;;  %v1008_v47 = vshrl.u32 %v940_v9, 16 }
 0x247   : > { %v892_v43 = vpop.trf.xlu1 }
 0x248   : > { %v999_v8 = vshrl.u32 %v892_v43, 16  ;;  %v997_v11 = vpack.i.b16 %v908_v35, %v892_v43  ;;  %v1143_v22 = vcombine.low %v953_v1, %v969_v61  ;;  %v1083_v33 = vrot.slane %v1075_v62, %v6491_v46 }
 0x249   : > { %v1144_v32 = vcombine.high %v953_v1, %v969_v61  ;;  %v6576_v61 = vrot.slane %v1076_v39, %v6491_v46 }
 0x24a   : > { %v1001_v41 = vpack.i.b16 %v1000_v7, %v999_v8  ;;  %v1211_v43 = vcombine.low %v6553_v5, %v997_v11  ;;  %v1151_v56 = vrot.slane %v1143_v22, %v6491_v46  ;;  %v1212_v1 = vcombine.high %v6553_v5, %v997_v11 }
 0x24b   : > { %v6545_v45 = vpop.trf.xlu1  ;;  %v1064_v22 = vshrl.u32 %v6543_v44, 16 }
 0x24c   : > { %v6583_v7 = vrot.slane %v1211_v43, %v6491_v46 }
 0x24f   : > { %v6547_v50 = vpop.trf.xlu1 }
 0x253   : > { %v923_v63 = vpop.trf.xlu1 }
 0x254   : > { %v973_v3 = vpack.i.b16 %v939_v51, %v923_v63  ;;  %v975_v4 = vshrl.u32 %v923_v63, 16  ;;  %v993_v63 = vpack.i.b16 %v992_v14, %v991_v59  ;;  %v1047_v14 = vshrl.u32 %v6531_v30, 16 }
 0x256   : > { %v977_v12 = vpack.i.b16 %v976_v58, %v975_v4  ;;  %v1091_v17 = vcombine.low %v957_v2, %v973_v3  ;;  %v1092_v24 = vcombine.high %v957_v2, %v973_v3  ;;  %v1279_v4 = vcombine.low %v985_v52, %v1001_v41 }
 0x257   : > { %v924_v31 = vpop.trf.xlu1 }
 0x258   : > { %v1005_v36 = vpack.i.b16 %v940_v9, %v924_v31  ;;  %v1099_v25 = vrot.slane %v1091_v17, %v6491_v46  ;;  %v1159_v37 = vcombine.low %v961_v10, %v977_v12  ;;  %v1007_v35 = vshrl.u32 %v924_v31, 16 }
 0x259   : > { %v1160_v15 = vcombine.high %v961_v10, %v977_v12  ;;  %v6568_v48 = vrot.slane %v1092_v24, %v6491_v46  ;;  %v6587_v10 = vrot.slane %v1144_v32, %v6491_v46  ;;  %v1280_v12 = vcombine.high %v985_v52, %v1001_v41 }
 0x25a   : > { %v1227_v49 = vcombine.low %v989_v18, %v1005_v36  ;;  %v1107_v51 = vcombine.low %v1083_v33, %v1099_v25  ;;  %v1167_v57 = vrot.slane %v1159_v37, %v6491_v46  ;;  %v1108_v62 = vcombine.high %v1083_v33, %v1099_v25 }
 0x25b   : > { %v1009_v2 = vpack.i.b16 %v1008_v47, %v1007_v35  ;;  %v6573_v3 = vpop.trf.xlu1  ;;  %v6580_v6 = vrot.slane %v1160_v15, %v6491_v46  ;;  %v1228_v8 = vcombine.high %v989_v18, %v1005_v36  ;;  %v1123_v5 = vcombine.low %v6576_v61, %v6568_v48  ;;  %v942_v18 = vpop.trf.xlu0 }
 0x25c   : > { %v1115_v58 = vrot.slane %v1107_v51, %v6499_v53  ;;  %v6571_v55 = vrot.slane %v1227_v49, %v6491_v46  ;;  %v1175_v60 = vcombine.low %v1151_v56, %v1167_v57  ;;  %v1176_v9 = vcombine.high %v1151_v56, %v1167_v57 }
 0x25d   : > { %v1122_v17 = vrot.slane %v1108_v62, %v6499_v53  ;;  %v1295_v31 = vcombine.low %v993_v63, %v1009_v2  ;;  %v1063_v24 = vshrl.u32 %v6547_v50, 16  ;;  %v1191_v36 = vcombine.low %v6587_v10, %v6580_v6 }
 0x25e   : > { %1619 = vxpose.xlu0.c.b16.start.end [1/1] (short) (narrow) %v1115_v58, 16  ;;  %v1183_v59 = vrot.slane %v1175_v60, %v6499_v53  ;;  %v1243_v11 = vcombine.low %v6583_v7, %v6571_v55  ;;  %v1244_v33 = vcombine.high %v6583_v7, %v6571_v55  ;;  %v6602_v25 = vrot.slane %v1279_v4, %v6491_v46 }
 0x25f   : > { %v6605_v37 = vrot.slane %v1212_v1, %v6491_v46  ;;  %v926_v39 = vpop.trf.xlu1  ;;  %v1190_v41 = vrot.slane %v1176_v9, %v6499_v53  ;;  %v6609_v47 = vrot.slane %v1295_v31, %v6491_v46  ;;  %v6612_v35 = vrot.slane %v1228_v8, %v6491_v46 }
 0x260   : > { %1635 = vxpose.xlu1.c.b16.start.end [1/1] (short) (narrow) %v1183_v59, 16  ;;  %v1296_v43 = vcombine.high %v993_v63, %v1009_v2  ;;  %v1048_v49 = vshrl.u32 %v6529_v29, 16  ;;  %v1072_v51 = vshrl.u32 %v942_v18, 16  ;;  %v6616_v15 = vrot.slane %v1123_v5, %v6499_v53 }
 0x261   : > { %v6619_v52 = vrot.slane %v1280_v12, %v6491_v46  ;;  %v1311_v32 = vcombine.low %v6602_v25, %v6609_v47  ;;  %v1312_v56 = vcombine.high %v6602_v25, %v6609_v47  ;;  %v1259_v57 = vcombine.low %v6605_v37, %v6612_v35 }
 0x262   : > { %1683 = vxpose.xlu0.c.b16.start.end [1/1] (short) (narrow) %v1122_v17, 16  ;;  %v6628_v62 = vrot.slane %v1296_v43, %v6491_v46  ;;  %v1061_v63 = vpack.i.b16 %v6543_v44, %v6547_v50  ;;  %v1069_v2 = vpack.i.b16 %v942_v18, %v926_v39  ;;  %v1071_v60 = vshrl.u32 %v926_v39, 16 }
 0x263   : > { %v1260_v1 = vcombine.high %v6605_v37, %v6612_v35  ;;  %v1065_v4 = vpack.i.b16 %v1064_v22, %v1063_v24  ;;  %v6636_v8 = vrot.slane %v1191_v36, %v6499_v53  ;;  %v1045_v12 = vpack.i.b16 %v6529_v29, %v6531_v30 }
 0x264   : > { %1699 = vxpose.xlu1.c.b16.start.end [1/1] (short) (narrow) %v1190_v41, 16  ;;  %v1327_v9 = vcombine.low %v6619_v52, %v6628_v62  ;;  %v1139_v5 = vcombine.high %v1115_v58, %v7698_v0  ;;  %v1328_v44 = vcombine.high %v6619_v52, %v6628_v62  ;;  %v1049_v50 = vpack.i.b16 %v1048_v49, %v1047_v14 }
 0x265   : > { %v1483_v18 = vcombine.low %v1045_v12, %v1061_v63  ;;  %v1073_v31 = vpack.i.b16 %v1072_v51, %v1071_v60  ;;  %v1499_v22 = vcombine.low %v6537_v38, %v1069_v2  ;;  %v1207_v24 = vcombine.high %v1183_v59, %v7698_v0 }
 0x266   : > { %1747 = vxpose.xlu0.c.b16.start.end [1/1] (short) (narrow) %v6616_v15, 16  ;;  %v1551_v36 = vcombine.low %v1049_v50, %v1065_v4  ;;  %v1140_v25 = vcombine.high %v1122_v17, %v7698_v0  ;;  %v1484_v37 = vcombine.high %v1045_v12, %v1061_v63  ;;  %v1500_v29 = vcombine.high %v6537_v38, %v1069_v2  ;;  %v6661_v17 = vpop.f32.mrf.mxu1 }
 0x267   : > { %v6651_v30 = vrot.slane %v1483_v18, %v6491_v46  ;;  %v6654_v58 = vrot.slane %v1499_v22, %v6491_v46  ;;  %v1567_v14 = vcombine.low %v6539_v40, %v1073_v31  ;;  %v1208_v39 = vcombine.high %v1190_v41, %v7698_v0 }
 0x268   : > { %1763 = vxpose.xlu1.c.b16.start.end [1/1] (short) (narrow) %v6636_v8, 16  ;;  %v6659_v59 = vrot.slane %v1551_v36, %v6491_v46  ;;  %v1552_v47 = vcombine.high %v1049_v50, %v1065_v4  ;;  %v1251_v38 = vrot.slane %v1243_v11, %v6499_v53  ;;  %v1568_v41 = vcombine.high %v6539_v40, %v1073_v31  ;;  %v5995_v62 = vpop.f32.mrf.mxu1 }
 0x269   : > { %v1515_v35 = vcombine.low %v6651_v30, %v6654_v58  ;;  %v6667_v43 = vrot.slane %v1567_v14, %v6491_v46  ;;  %v1516_v49 = vcombine.high %v6651_v30, %v6654_v58  ;;  %v6673_v51 = vrot.slane %v1484_v37, %v6491_v46 }
 0x26a   : > { %1651 = vxpose.xlu0.c.b16.start.end [1/1] (short) (narrow) %v1139_v5, 16  ;;  %v6676_v52 = vrot.slane %v1500_v29, %v6491_v46  ;;  %v1319_v63 = vrot.slane %v1311_v32, %v6499_v53  ;;  %v6682_v2 = vrot.slane %v1552_v47, %v6491_v46  ;;  %v6685_v60 = vrot.slane %v1568_v41, %v6491_v46  ;;  %v518_v4 = vpop.f32.mrf.mxu1 }
 0x26b   : > { %v1583_v11 = vcombine.low %v6659_v59, %v6667_v43  ;;  %v1258_v12 = vrot.slane %v1244_v33, %v6499_v53  ;;  %v1584_v32 = vcombine.high %v6659_v59, %v6667_v43  ;;  %v1192_v31 = vcombine.high %v6587_v10, %v6580_v6 }
 0x26c   : > { %1667 = vxpose.xlu1.c.b16.start.end [1/1] (short) (narrow) %v1207_v24, 16  ;;  %v1531_v40 = vcombine.low %v6673_v51, %v6676_v52  ;;  %v1532_v5 = vcombine.high %v6673_v51, %v6676_v52  ;;  %v1600_v50 = vcombine.high %v6682_v2, %v6685_v60  ;;  %v1599_v18 = vcombine.low %v6682_v2, %v6685_v60  ;;  %v5996_v22 = vpop.f32.mrf.mxu1 }
 0x26d   : > { %v1326_v55 = vrot.slane %v1312_v56, %v6499_v53  ;;  %v1267_v7 = vrot.slane %v1259_v57, %v6499_v53  ;;  %v1124_v33 = vcombine.high %v6576_v61, %v6568_v48  ;;  %v1335_v24 = vrot.slane %v1327_v9, %v6499_v53 }
 0x26e   : > { %1715 = vxpose.xlu0.c.b16.start.end [1/1] (short) (narrow) %v1140_v25, 16  ;;  %v1274_v36 = vrot.slane %v1260_v1, %v6499_v53  ;;  %v1040_v25 = vshrl.u32 %v6562_v54, 16  ;;  %v1039_v37 = vshrl.u32 %v6573_v3, 16  ;;  %v1342_v29 = vrot.slane %v1328_v44, %v6499_v53 }
 0x26f   : > { %v1037_v56 = vpack.i.b16 %v6562_v54, %v6573_v3  ;;  %v1275_v57 = vcombine.high %v1251_v38, %v7698_v0  ;;  %v1024_v14 = vshrl.u32 %v6535_v34, 16  ;;  %v1031_v9 = vshrl.u32 %v6545_v45, 16 }
 0x270   : > { %1731 = vxpose.xlu1.c.b16.start.end [1/1] (short) (narrow) %v1208_v39, 16  ;;  %v1032_v39 = vshrl.u32 %v6541_v42, 16  ;;  %v1023_v1 = vshrl.u32 %v6519_v16, 16  ;;  %v1021_v47 = vpack.i.b16 %v6535_v34, %v6519_v16  ;;  %v1029_v44 = vpack.i.b16 %v6541_v42, %v6545_v45 }
 0x271   : > { %v1015_v54 = vshrl.u32 %v6527_v27, 16  ;;  %v1016_v3 = vshrl.u32 %v6525_v26, 16  ;;  %v1343_v41 = vcombine.high %v1319_v63, %v7698_v0  ;;  %v1013_v62 = vpack.i.b16 %v6525_v26, %v6527_v27 }
 0x272   : > { %1875 = vxpose.xlu0.c.b16.start.end [1/1] (short) (narrow) %v1251_v38, 16  ;;  %v1041_v38 = vpack.i.b16 %v1040_v25, %v1039_v37  ;;  %v1363_v4 = vcombine.low %v1021_v47, %v1037_v56  ;;  %v1276_v22 = vcombine.high %v1258_v12, %v7698_v0  ;;  %v1025_v20 = vpack.i.b16 %v1024_v14, %v1023_v1 }
 0x273   : > { %v1033_v19 = vpack.i.b16 %v1032_v39, %v1031_v9  ;;  %v1347_v16 = vcombine.low %v1013_v62, %v1029_v44  ;;  %v1017_v34 = vpack.i.b16 %v1016_v3, %v1015_v54  ;;  %v1344_v42 = vcombine.high %v1326_v55, %v7698_v0 }
 0x274   : > { %1891 = vxpose.xlu1.c.b16.start.end [1/1] (short) (narrow) %v1319_v63, 16  ;;  %v1431_v45 = vcombine.low %v1025_v20, %v1041_v38  ;;  %v1371_v25 = vrot.slane %v1363_v4, %v6491_v46  ;;  %v1345_v27 = vcombine.high %v1335_v24, %v7698_v0  ;;  %v1364_v37 = vcombine.high %v1021_v47, %v1037_v56 }
 0x275   : > { %v1415_v63 = vcombine.low %v1017_v34, %v1033_v19  ;;  %v1355_v26 = vrot.slane %v1347_v16, %v6491_v46  ;;  %v1278_v14 = vcombine.high %v1274_v36, %v7698_v0  ;;  %v1348_v9 = vcombine.high %v1013_v62, %v1029_v44 }
 0x276   : > { %1939 = vxpose.xlu0.c.b16.start.end [1/1] (short) (narrow) %v1258_v12, 16  ;;  %v1439_v12 = vrot.slane %v1431_v45, %v6491_v46  ;;  %v1432_v54 = vcombine.high %v1025_v20, %v1041_v38  ;;  %v1416_v4 = vcombine.high %v1017_v34, %v1033_v19  ;;  %v1546_v58 = vrot.slane %v1532_v5, %v6499_v53 }
 0x277   : > { %v1379_v39 = vcombine.low %v1355_v26, %v1371_v25  ;;  %v1598_v51 = vrot.slane %v1584_v32, %v6499_v53  ;;  %v532_v52 = vrot.slane %v6478_v28, %v6491_v46 }
 0x278   : > { %1955 = vxpose.xlu1.c.b16.start.end [1/1] (short) (narrow) %v1326_v55, 16  ;;  %v1423_v55 = vrot.slane %v1415_v63, %v6491_v46  ;;  %v1446_v44 = vrot.slane %v1432_v54, %v6491_v46  ;;  %v1430_v20 = vrot.slane %v1416_v4, %v6491_v46  ;;  %v1206_v54 = vrot.slane %v1192_v31, %v6499_v53 }
 0x279   : > { %v1387_v3 = vrot.slane %v1379_v39, %v6499_v53  ;;  %v1550_v4 = vcombine.high %v1546_v58, %v7698_v0 }
 0x27a   : > { %2003 = vxpose.xlu0.c.b16.start.end [1/1] (short) (narrow) %v1267_v7, 16  ;;  %v1447_v1 = vcombine.low %v1423_v55, %v1439_v12  ;;  %v1448_v47 = vcombine.high %v1423_v55, %v1439_v12  ;;  %v1523_v55 = vrot.slane %v1515_v35, %v6499_v53  ;;  %v1607_v35 = vrot.slane %v1599_v18, %v6499_v53 }
 0x27b   : > { %v1210_v43 = vcombine.high %v1206_v54, %v7698_v0 }
 0x27c   : > { %2019 = vxpose.xlu1.c.b16.start.end [1/1] (short) (narrow) %v1335_v24, 16  ;;  %v1378_v24 = vrot.slane %v1364_v37, %v6491_v46  ;;  %v1455_v56 = vrot.slane %v1447_v1, %v6499_v53  ;;  %v1462_v38 = vrot.slane %v1448_v47, %v6499_v53  ;;  %v1614_v1 = vrot.slane %v1600_v50, %v6499_v53 }
 0x27d   : > { %v1617_v30 = vcombine.high %v1607_v35, %v7698_v0  ;;  %v1547_v60 = vcombine.high %v1523_v55, %v7698_v0  ;;  %v1209_v50 = vcombine.high %v6636_v8, %v7698_v0 }
 0x27e   : > { %2067 = vxpose.xlu0.c.b16.start.end [1/1] (short) (narrow) %v1274_v36, 16  ;;  %v1362_v36 = vrot.slane %v1348_v9, %v6491_v46  ;;  %v1479_v63 = vcombine.high %v1455_v56, %v7698_v0  ;;  %v1591_v9 = vrot.slane %v1583_v11, %v6499_v53  ;;  %v1539_v11 = vrot.slane %v1531_v40, %v6499_v53 }
 0x280   : > { %2083 = vxpose.xlu1.c.b16.start.end [1/1] (short) (narrow) %v1342_v29, 16  ;;  %v1396_v16 = vcombine.high %v1362_v36, %v1378_v24  ;;  %v1549_v6 = vcombine.high %v1539_v11, %v7698_v0  ;;  %v1615_v47 = vcombine.high %v1591_v9, %v7698_v0 }
 0x282   : > { %1907 = vxpose.xlu0.c.b16.start.end [1/1] (short) (narrow) %v1275_v57, 16  ;;  %v1277_v57 = vcombine.high %v1267_v7, %v7698_v0  ;;  %v1346_v7 = vcombine.high %v1342_v29, %v7698_v0  ;;  %v1395_v29 = vcombine.low %v1362_v36, %v1378_v24  ;;  %v1410_v45 = vrot.slane %v1396_v16, %v6499_v53 }
 0x284   : > { %1923 = vxpose.xlu1.c.b16.start.end [1/1] (short) (narrow) %v1343_v41, 16  ;;  %v1380_v41 = vcombine.high %v1355_v26, %v1371_v25  ;;  %v1403_v19 = vrot.slane %v1395_v29, %v6499_v53  ;;  %v1411_v25 = vcombine.high %v1387_v3, %v7698_v0  ;;  %v1616_v29 = vcombine.high %v1598_v51, %v7698_v0 }
 0x286   : > { %1971 = vxpose.xlu0.c.b16.start.end [1/1] (short) (narrow) %v1276_v22, 16  ;;  %v1394_v62 = vrot.slane %v1380_v41, %v6499_v53  ;;  %v1463_v22 = vcombine.low %v1430_v20, %v1446_v44  ;;  %v1413_v12 = vcombine.high %v1403_v19, %v7698_v0 }
 0x288   : > { %1987 = vxpose.xlu1.c.b16.start.end [1/1] (short) (narrow) %v1344_v42, 16  ;;  %v1471_v34 = vrot.slane %v1463_v22, %v6499_v53  ;;  %v1464_v42 = vcombine.high %v1430_v20, %v1446_v44  ;;  %v1412_v26 = vcombine.high %v1394_v62, %v7698_v0  ;;  %v1141_v22 = vcombine.high %v6616_v15, %v7698_v0 }
 0x28a   : > { %2035 = vxpose.xlu0.c.b16.start.end [1/1] (short) (narrow) %v1277_v57, 16  ;;  %v1478_v57 = vrot.slane %v1464_v42, %v6499_v53  ;;  %v1481_v37 = vcombine.high %v1471_v34, %v7698_v0 }
 0x28c   : > { %2051 = vxpose.xlu1.c.b16.start.end [1/1] (short) (narrow) %v1345_v27, 16  ;;  %v1480_v27 = vcombine.high %v1462_v38, %v7698_v0  ;;  %v1482_v39 = vcombine.high %v1478_v57, %v7698_v0 }
 0x28e   : > { %2099 = vxpose.xlu0.c.b16.start.end [1/1] (short) (narrow) %v1278_v14, 16  ;;  %v1414_v14 = vcombine.high %v1410_v45, %v7698_v0 }
 0x290   : > { %2115 = vxpose.xlu1.c.b16.start.end [1/1] (short) (narrow) %v1346_v7, 16  ;;  %v1530_v7 = vrot.slane %v1516_v49, %v6499_v53  ;;  %v1618_v49 = vcombine.high %v1614_v1, %v7698_v0 }
 0x292   : > { %2131 = vxpose.xlu0.c.b16.start.end [1/1] (short) (narrow) %v1387_v3, 16  ;;  %v1548_v3 = vcombine.high %v1530_v7, %v7698_v0 }
 0x294   : > { %2147 = vxpose.xlu1.c.b16.start.end [1/1] (short) (narrow) %v1455_v56, 16 }
 0x296   : > { %2195 = vxpose.xlu0.c.b16.start.end [1/1] (short) (narrow) %v1394_v62, 16 }
 0x298   : > { %2211 = vxpose.xlu1.c.b16.start.end [1/1] (short) (narrow) %v1462_v38, 16 }
 0x29a   : > { %2259 = vxpose.xlu0.c.b16.start.end [1/1] (short) (narrow) %v1403_v19, 16 }
 0x29c   : > { %2275 = vxpose.xlu1.c.b16.start.end [1/1] (short) (narrow) %v1471_v34, 16  ;;  %v1138_v34 = vrot.slane %v1124_v33, %v6499_v53 }
 0x29e   : > { %2323 = vxpose.xlu0.c.b16.start.end [1/1] (short) (narrow) %v1410_v45, 16  ;;  %v307_v45 = vsub.s32 2, %v6467_v21 }
 0x2a0   : > { %2339 = vxpose.xlu1.c.b16.start.end [1/1] (short) (narrow) %v1478_v57, 16  ;;  %v308_v15 = vrot.slane %v6473_v23, %v307_v45 }
 0x2a2   : > { %2163 = vxpose.xlu0.c.b16.start.end [1/1] (short) (narrow) %v1411_v25, 16  ;;  %v1142_v25 = vcombine.high %v1138_v34, %v7698_v0 }
 0x2a4   : > { %2179 = vxpose.xlu1.c.b16.start.end [1/1] (short) (narrow) %v1479_v63, 16 }
 0x2a6   : > { %2227 = vxpose.xlu0.c.b16.start.end [1/1] (short) (narrow) %v1412_v26, 16 }
 0x2a8   : > { %2243 = vxpose.xlu1.c.b16.start.end [1/1] (short) (narrow) %v1480_v27, 16  ;;  %v6863_v27 = vadd.f32 %v6661_v17, %v308_v15 }
 0x2aa   : > { %2291 = vxpose.xlu0.c.b16.start.end [1/1] (short) (narrow) %v1413_v12, 16  ;;  %7722 = vst [vmem:[#allocation20_spill] sm:$0xff] %v6863_v27 }
 0x2ac   : > { %2307 = vxpose.xlu1.c.b16.start.end [1/1] (short) (narrow) %v1481_v37, 16 }
 0x2ae   : > { %2355 = vxpose.xlu0.c.b16.start.end [1/1] (short) (narrow) %v1414_v14, 16 }
 0x2b0   : > { %2371 = vxpose.xlu1.c.b16.start.end [1/1] (short) (narrow) %v1482_v39, 16 }
 0x2b2   : > { %2387 = vxpose.xlu0.c.b16.start.end [1/1] (short) (narrow) %v1523_v55, 16 }
 0x2b4   : > { %2403 = vxpose.xlu1.c.b16.start.end [1/1] (short) (narrow) %v1591_v9, 16 }
 0x2b6   : > { %2451 = vxpose.xlu0.c.b16.start.end [1/1] (short) (narrow) %v1530_v7, 16 }
 0x2b8   : > { %2595 = vxpose.xlu1.c.b16.start.end [1/1] (short) (narrow) %v1614_v1, 16 }
 0x2ba   : > { %2515 = vxpose.xlu0.c.b16.start.end [1/1] (short) (narrow) %v1539_v11, 16 }
 0x2bc   : > { %2563 = vxpose.xlu1.c.b16.start.end [1/1] (short) (narrow) %v1617_v30, 16 }
 0x2be   : > { %2579 = vxpose.xlu0.c.b16.start.end [1/1] (short) (narrow) %v1546_v58, 16 }
 0x2c0   : > { %v6788_v2 = vpop.trf.xlu0  ;;  %2627 = vxpose.xlu1.c.b16.start.end [1/1] (short) (narrow) %v1618_v49, 16 }
 0x2c1   : > { %7717 = vst [vmem:[#allocation15_spill] sm:$0xff] %v6788_v2 }
 0x2c2   : > { %2419 = vxpose.xlu0.c.b16.start.end [1/1] (short) (narrow) %v1547_v60, 16  ;;  %v6791_v40 = vpop.trf.xlu1 }
 0x2c4   : > { %v6795_v18 = vpop.trf.xlu0  ;;  %1795 = vxpose.xlu1.c.b16.start.end [1/1] (short) (narrow) %v1209_v50, 16 }
 0x2c5   : > { %7718 = vst [vmem:[#allocation16_spill] sm:$0xff] %v6795_v18 }
 0x2c6   : > { %2467 = vxpose.xlu0.c.b16.start.end [1/1] (short) (narrow) %v1598_v51, 16  ;;  %v6803_v5 = vpop.trf.xlu1 }
 0x2c8   : > { %v6809_v8 = vpop.trf.xlu0  ;;  %1827 = vxpose.xlu1.c.b16.start.end [1/1] (short) (narrow) %v1206_v54, 16 }
 0x2c9   : > { %7719 = vst [vmem:[#allocation17_spill] sm:$0xff] %v6809_v8 }
 0x2ca   : > { %2483 = vxpose.xlu0.c.b16.start.end [1/1] (short) (narrow) %v1548_v3, 16  ;;  %v6812_v59 = vpop.trf.xlu1 }
 0x2cb   : > { %7720 = vst [vmem:[#allocation18_spill] sm:$0xff] %v6812_v59 }
 0x2cc   : > { %v6815_v32 = vpop.trf.xlu0  ;;  %1859 = vxpose.xlu1.c.b16.start.end [1/1] (short) (narrow) %v1210_v43, 16 }
 0x2ce   : > { %2531 = vxpose.xlu0.c.b16.start.end [1/1] (short) (narrow) %v1607_v35, 16  ;;  %v6817_v41 = vpop.trf.xlu1 }
 0x2d0   : > { %v6819_v24 = vpop.trf.xlu0 }
 0x2d2   : > { %2547 = vxpose.xlu0.c.b16.start.end [1/1] (short) (narrow) %v1549_v6, 16  ;;  %v6822_v10 = vpop.trf.xlu1  ;;  %v7724_v6 = vmov 0.0  }
 0x2d4   : > { %v6824_v31 = vpop.trf.xlu0 }
 0x2d6   : > { %2611 = vxpose.xlu0.c.b16.start.end [1/1] (short) (narrow) %v1550_v4, 16  ;;  %v6827_v36 = vpop.trf.xlu1  ;;  %v540_v4 = vcombine.high %v6515_v13, %v7724_v6 }
 0x2d8   : > { %v6829_v56 = vpop.trf.xlu0 }
 0x2da   : > { %2435 = vxpose.xlu0.c.b16.start.end [1/1] (short) (narrow) %v1615_v47, 16  ;;  %v6832_v44 = vpop.trf.xlu1 }
 0x2dc   : > { %v6834_v62 = vpop.trf.xlu0 }
 0x2de   : > { %2499 = vxpose.xlu0.c.b16.start.end [1/1] (short) (narrow) %v1616_v29, 16  ;;  %v6837_v20 = vpop.trf.xlu1  ;;  %v525_v29 = vcombine.high %v6478_v28, %v7724_v6 }
 0x2e0   : > { %v6839_v38 = vpop.trf.xlu0  ;;  %v539_v45 = vrot.slane %v525_v29, %v6491_v46 }
 0x2e2   : > { %1779 = vxpose.xlu0.c.b16.start.end [1/1] (short) (narrow) %v1141_v22, 16  ;;  %v6843_v19 = vpop.trf.xlu1 }
 0x2e4   : > { %v6845_v16 = vpop.trf.xlu0 }
 0x2e6   : > { %1811 = vxpose.xlu0.c.b16.start.end [1/1] (short) (narrow) %v1138_v34, 16  ;;  %v6851_v42 = vpop.trf.xlu1  ;;  %v554_v34 = vrot.slane %v540_v4, %v6491_v46 }
 0x2e8   : > { %v6854_v57 = vpop.trf.xlu0  ;;  %v571_v21 = vcombine.low %v539_v45, %v554_v34  ;;  %v572_v2 = vcombine.high %v539_v45, %v554_v34 }
 0x2ea   : > { %1843 = vxpose.xlu0.c.b16.start.end [1/1] (short) (narrow) %v1142_v25, 16  ;;  %v6858_v63 = vpop.trf.xlu1  ;;  %v547_v25 = vrot.slane %v6515_v13, %v6491_v46  ;;  %v579_v59 = vrot.slane %v571_v21, %v6499_v53  ;;  %v2790_v21 = vcombine.low %v6827_v36, %v6832_v44 }
 0x2ec   : > { %v6860_v26 = vpop.trf.xlu0  ;;  %v556_v8 = vcombine.high %v532_v52, %v547_v25 }
 0x2ed   : > { %7721 = vst [vmem:[#allocation19_spill] sm:$0xff] %v6860_v26  ;;  %v6937_v26 = vrot.slane %v572_v2, %v6499_v53  ;;  %v2806_v2 = vcombine.low %v6837_v20, %v6843_v19 }
 0x2ee   : > { %v6865_v48 = vpop.trf.xlu1  ;;  %v6934_v29 = vrot.slane %v556_v8, %v6499_v53  ;;  %v2757_v8 = vcombine.low %v6834_v62, %v6839_v38 }
 0x2f0   : > { %v6867_v61 = vpop.trf.xlu0 }
 0x2f2   : > { %v6869_v33 = vpop.trf.xlu1 }
 0x2f3   : > { %678 = vrot.lane.b32.xlu0 %v6863_v27, %s6293_s10  ;;  %v555_v27 = vcombine.low %v532_v52, %v547_v25  ;;  %v2741_v52 = vcombine.low %v6824_v31, %v6829_v56  ;;  %v6961_v31 = vcombine.high %v6937_v26, %v7724_v6  ;;  %v6980_v25 = vrot.slane %v2790_v21, %v6491_v46 }
 0x2f4   : > { %v6873_v12 = vpop.trf.xlu0 }
 0x2f5   : > { %v563_v4 = vrot.slane %v555_v27, %v6499_v53  ;;  %v6977_v19 = vrot.slane %v2741_v52, %v6491_v46 }
 0x2f6   : > { %v6875_v37 = vpop.trf.xlu1 }
 0x2f7   : > { %v5926_v28 = vpack.c.bf16 %v579_v59, %v563_v4  ;;  %v6945_v34 = vcombine.high %v563_v4, %v7724_v6  ;;  %v6983_v4 = vrot.slane %v2757_v8, %v6491_v46 }
 0x2f8   : > { %v6877_v23 = vpop.trf.xlu0 }
 0x2f9   : > { %v6964_v56 = vrot.slane %v5926_v28, %v6491_v46  ;;  %v6986_v28 = vrot.slane %v2806_v2, %v6491_v46 }
 0x2fa   : > { %v6879_v14 = vpop.trf.xlu1 }
 0x2fb   : > { %7726 = vst [vmem:[#allocation23_spill] sm:$0xff] %v6964_v56  ;;  %v2888_v36 = vcombine.low %v6875_v37, %v6879_v14  ;;  %v2798_v14 = vcombine.low %v6851_v42, %v6858_v63 }
 0x2fc   : > { %v6881_v39 = vpop.trf.xlu0 }
 0x2fe   : > { %v6883_v17 = vpop.trf.xlu1 }
 0x300   : > { %v6885_v55 = vpop.trf.xlu0 }
 0x302   : > { %v6887_v9 = vpop.trf.xlu1 }
 0x303   : > { %v2904_v44 = vcombine.low %v6883_v17, %v6887_v9  ;;  %v2814_v17 = vcombine.low %v6865_v48, %v6869_v33  ;;  %v2855_v9 = vcombine.low %v6881_v39, %v6885_v55 }
 0x304   : > { %v6889_v7 = vpop.trf.xlu0 }
 0x305   : > { %v2911_v42 = vrot.slane %v2904_v44, %v6491_v46 }
 0x306   : > { %v6891_v1 = vpop.trf.xlu1 }
 0x308   : > { %v6893_v35 = vpop.trf.xlu0 }
 0x309   : > { %v2847_v63 = vcombine.low %v6889_v7, %v6893_v35  ;;  %v2862_v7 = vrot.slane %v2855_v9, %v6491_v46 }
 0x30a   : > { %v6895_v11 = vpop.trf.xlu1 }
 0x30b   : > { %v2896_v20 = vcombine.low %v6891_v1, %v6895_v11  ;;  %v2839_v11 = vcombine.low %v6873_v12, %v6877_v23 }
 0x30c   : > { %v6897_v30 = vpop.trf.xlu0 }
 0x30d   : > { %v2903_v48 = vrot.slane %v2896_v20, %v6491_v46 }
 0x30e   : > { %v6899_v58 = vpop.trf.xlu1 }
 0x310   : > { %v6901_v49 = vpop.trf.xlu0 }
 0x311   : > { %v2863_v1 = vcombine.low %v6897_v30, %v6901_v49  ;;  %v2749_v49 = vcombine.low %v6845_v16, %v6854_v57  ;;  %v2846_v16 = vrot.slane %v2839_v11, %v6491_v46  ;;  %v2854_v57 = vrot.slane %v2847_v63, %v6491_v46 }
 0x312   : > { %v6905_v50 = vpop.trf.xlu1 }
 0x313   : > { %v2912_v52 = vcombine.low %v6899_v58, %v6905_v50  ;;  %v2870_v35 = vrot.slane %v2863_v1, %v6491_v46 }
 0x314   : > { %v6903_v60 = vpop.trf.xlu0 }
 0x315   : > { %v2919_v33 = vrot.slane %v2912_v52, %v6491_v46 }
 0x316   : > { %v6909_v54 = vpop.trf.xlu1 }
 0x317   : > { %7723 = vst [vmem:[#allocation21_spill] sm:$0xff] %v6909_v54 }
 0x318   : > { %v6907_v51 = vpop.trf.xlu0 }
 0x319   : > { %v2937_v58 = vcombine.low %v6903_v60, %v6907_v51  ;;  %v7727_v60 = vld [vmem:[#allocation19_spill] sm:$0xff] }
 0x31a   : > { %v6917_v47 = vpop.trf.xlu1  ;;  %v2765_v51 = vcombine.low %v7727_v60, %v6867_v61 }
 0x31c   : > { %v6911_v3 = vpop.trf.xlu0  ;;  %v2772_v52 = vrot.slane %v2765_v51, %v6491_v46 }
 0x31e   : > { %v2571_v15 = vpop.trf.xlu1 }
 0x320   : > { %v6913_v43 = vpop.trf.xlu0 }
 0x321   : > { %v2953_v21 = vcombine.low %v6911_v3, %v6913_v43  ;;  %v2944_v3 = vrot.slane %v2937_v58, %v6491_v46  ;;  %v2871_v58 = vcombine.low %v2846_v16, %v2854_v57 }
 0x322   : > { %v2635_v54 = vpop.trf.xlu1 }
 0x323   : > { %v3010_v38 = vcombine.low %v2571_v15, %v2635_v54  ;;  %v2960_v55 = vrot.slane %v2953_v21, %v6491_v46  ;;  %v2805_v54 = vrot.slane %v2798_v14, %v6491_v46  ;;  %v2879_v21 = vcombine.low %v2862_v7, %v2870_v35 }
 0x324   : > { %v6921_v22 = vpop.trf.xlu0  ;;  %v2756_v14 = vrot.slane %v2749_v49, %v6491_v46  ;;  %v7735_v35 = vcombine.low %v6817_v41, %v6822_v10 }
 0x325   : > { %v3017_v12 = vrot.slane %v3010_v38, %v6491_v46  ;;  %v2822_v11 = vcombine.low %v6980_v25, %v2805_v54 }
 0x326   : > { %v6953_v27 = vpop.trf.xlu1  ;;  %v2707_v54 = vrot.slane %v7735_v35, %v6491_v46 }
 0x328   : > { %v6927_v0 = vpop.trf.xlu0 }
 0x329   : > { %7725 = vst [vmem:[#allocation22_spill] sm:$0xff] %v6927_v0  ;;  %v6940_v0 = vcombine.high %v579_v59, %v7724_v6  ;;  %v6957_v59 = vcombine.high %v6934_v29, %v7724_v6 }
 0x32a   : > { %v1835_v62 = vpop.trf.xlu1 }
 0x32c   : > { %v2491_v18 = vpop.trf.xlu0 }
 0x32d   : > { %v2945_v2 = vcombine.low %v6921_v22, %v2491_v18  ;;  %v2895_v18 = vrot.slane %v2888_v36, %v6491_v46  ;;  %v2928_v36 = vcombine.low %v2911_v42, %v2919_v33  ;;  %v2781_v33 = vcombine.low %v6983_v4, %v2772_v52 }
 0x32e   : > { %v1867_v15 = vpop.trf.xlu1  ;;  %v7734_v4 = vcombine.low %v6791_v40, %v6803_v5  ;;  %v7736_v40 = vcombine.low %v6815_v32, %v6819_v24 }
 0x32f   : > { %v2952_v23 = vrot.slane %v2945_v2, %v6491_v46  ;;  %v2920_v61 = vcombine.low %v2895_v18, %v2903_v48 }
 0x330   : > { %v2539_v13 = vpop.trf.xlu0  ;;  %v7728_v43 = vld [vmem:[#allocation22_spill] sm:$0xff]  ;;  %v2699_v7 = vrot.slane %v7734_v4, %v6491_v46  ;;  %v2658_v5 = vrot.slane %v7736_v40, %v6491_v46 }
 0x331   : > { %v3002_v56 = vcombine.low %v2539_v13, %v6917_v47  ;;  %v7729_v47 = vld [vmem:[#allocation21_spill] sm:$0xff]  ;;  %v2969_v44 = vcombine.low %v2944_v3, %v2952_v23  ;;  %v7732_v23 = vld [vmem:[#allocation16_spill] sm:$0xff] }
 0x332   : > { %v2986_v22 = vcombine.low %v7729_v47, %v7728_v43  ;;  %v2829_v43 = vrot.slane %v2822_v11, %v6499_v53 }
 0x333   : > { %v3009_v30 = vrot.slane %v3002_v56, %v6491_v46 }
 0x334   : > { %v2555_v45 = vpop.trf.xlu0 }
 0x335   : > { %v3026_v20 = vcombine.low %v3009_v30, %v3017_v12  ;;  %v7731_v12 = vld [vmem:[#allocation15_spill] sm:$0xff] }
 0x336   : > { %v7733_v30 = vcombine.low %v7731_v12, %v7732_v23 }
 0x337   : > { %v3033_v63 = vrot.slane %v3026_v20, %v6499_v53  ;;  %v2724_v20 = vcombine.low %v2699_v7, %v2707_v54 }
 0x338   : > { %v2619_v8 = vpop.trf.xlu0  ;;  %v2650_v49 = vrot.slane %v7733_v30, %v6491_v46 }
 0x339   : > { %v2961_v37 = vcombine.low %v2555_v45, %v2619_v8  ;;  %v2821_v45 = vrot.slane %v2814_v17, %v6491_v46  ;;  %v7730_v8 = vld [vmem:[#allocation18_spill] sm:$0xff]  ;;  %v2993_v17 = vrot.slane %v2986_v22, %v6491_v46 }
 0x33a   : > { %v2708_v2 = vcombine.low %v7730_v8, %v1835_v62  ;;  %v2935_v62 = vrot.slane %v2928_v36, %v6499_v53 }
 0x33b   : > { %v2968_v50 = vrot.slane %v2961_v37, %v6491_v46  ;;  %v2716_v37 = vcombine.low %v6953_v27, %v1867_v15  ;;  %v2830_v18 = vcombine.low %v6986_v28, %v2821_v45  ;;  %v2976_v27 = vrot.slane %v2969_v44, %v6499_v53  ;;  %v7737_v45 = vld [vmem:[#allocation17_spill] sm:$0xff] }
 0x33c   : > { %v2443_v39 = vpop.trf.xlu0  ;;  %v5929_v28 = vpack.c.bf16 %v6961_v31, %v6957_v59  ;;  %v2773_v59 = vcombine.low %v6977_v19, %v2756_v14  ;;  %v2878_v31 = vrot.slane %v2871_v58, %v6499_v53  ;;  %v2675_v14 = vcombine.low %v2650_v49, %v2658_v5 }
 0x33d   : > { %v2977_v13 = vcombine.low %v2960_v55, %v2968_v50  ;;  %v2927_v50 = vrot.slane %v2920_v61, %v6499_v53  ;;  %v2715_v55 = vrot.slane %v2708_v2, %v6491_v46  ;;  %v2723_v25 = vrot.slane %v2716_v37, %v6491_v46 }
 0x33e   : > { %v2837_v47 = vrot.slane %v2830_v18, %v6499_v53  ;;  %v804_v44 = vrot.slane %v5929_v28, %v6491_v46  ;;  %v2780_v32 = vrot.slane %v2773_v59, %v6499_v53  ;;  %v7739_v2 = vpack.c.bf16 %v6937_v26, %v6934_v29  ;;  %v7741_v59 = vld [vmem:[#allocation20_spill] sm:$0xff] }
 0x33f   : > { %v2984_v9 = vrot.slane %v2977_v13, %v6499_v53  ;;  %v2936_v15 = vcombine.low %v2927_v50, %v2935_v62  ;;  %v2788_v13 = vrot.slane %v2781_v33, %v6499_v53  ;;  %v2732_v41 = vcombine.low %v2715_v55, %v2723_v25 }
 0x340   : > { %v2507_v56 = vpop.trf.xlu0  ;;  %v2838_v8 = vcombine.low %v2829_v43, %v2837_v47  ;;  %v780_v37 = vrot.slane %v7739_v2, %v6491_v46  ;;  %v2731_v58 = vrot.slane %v2724_v20, %v6499_v53 }
 0x341   : > { %v2994_v38 = vcombine.low %v2443_v39, %v2507_v56  ;;  %v2886_v39 = vrot.slane %v2879_v21, %v6499_v53  ;;  %v2985_v51 = vcombine.low %v2976_v27, %v2984_v9  ;;  %v7738_v56 = vpack.c.bf16 %v6940_v0, %v6945_v34 }
 0x342   : > { %v3056_v21 = vshrl.u32 %v2936_v15, 16  ;;  %v2789_v34 = vcombine.low %v2780_v32, %v2788_v13  ;;  %v3048_v50 = vshrl.u32 %v2838_v8, 16  ;;  %v2682_v27 = vrot.slane %v2675_v14, %v6499_v53 }
 0x343   : > { %v3001_v1 = vrot.slane %v2994_v38, %v6491_v46  ;;  %v2887_v10 = vcombine.low %v2878_v31, %v2886_v39  ;;  %v3063_v57 = vshrl.u32 %v2985_v51, 16  ;;  %v796_v36 = vrot.slane %v7738_v56, %v6491_v46 }
 0x344   : > { %v1787_v42 = vpop.trf.xlu0  ;;  %v3047_v33 = vshrl.u32 %v2789_v34, 16  ;;  %v688_v31 = vrot.slane %v7741_v59, %v6491_v46 }
 0x345   : > { %v3018_v48 = vcombine.low %v2993_v17, %v3001_v1  ;;  %v3055_v0 = vshrl.u32 %v2887_v10, 16  ;;  %v2739_v17 = vrot.slane %v2732_v41, %v6499_v53  ;;  %v3053_v11 = vpack.i.b16 %v2936_v15, %v2887_v10 }
 0x346   : > { %v805_v18 = vcombine.low %v796_v36, %v804_v44  ;;  %v3049_v25 = vpack.i.b16 %v3048_v50, %v3047_v33  ;;  %v681_v10 = vcombine.high %v7741_v59, %v7724_v6 }
 0x347   : > { %v3025_v60 = vrot.slane %v3018_v48, %v6499_v53  ;;  %v3057_v29 = vpack.i.b16 %v3056_v21, %v3055_v0  ;;  %v3045_v48 = vpack.i.b16 %v2838_v8, %v2789_v34  ;;  %v2740_v39 = vcombine.low %v2731_v58, %v2739_v17 }
 0x348   : > { %v1819_v3 = vpop.trf.xlu0  ;;  %v812_v55 = vrot.slane %v805_v18, %v6499_v53 }
 0x349   : > { %v3034_v22 = vcombine.low %v3025_v60, %v3033_v63  ;;  %v2659_v19 = vcombine.low %v7737_v45, %v1819_v3  ;;  %v3040_v49 = vshrl.u32 %v2740_v39, 16 }
 0x34a   : > { %v817_v60 = vshrl.u32 %v812_v55, 16 }
 0x34b   : > { %v3061_v16 = vpack.i.b16 %v3034_v22, %v2985_v51  ;;  %v3064_v61 = vshrl.u32 %v3034_v22, 16  ;;  %v2666_v9 = vrot.slane %v2659_v19, %v6491_v46 }
 0x34c   : > { %v1851_v24 = vpop.trf.xlu0 }
 0x34d   : > { %v2667_v38 = vcombine.low %v1787_v42, %v1851_v24  ;;  %5998 = vmatpush3.bf16.msra.mxu0 %v3061_v16  ;;  %v3065_v52 = vpack.i.b16 %v3064_v61, %v3063_v57  ;;  %v7740_v42 = vld [vmem:[#allocation23_spill] sm:$0xff]  ;;  %v695_v57 = vrot.slane %v681_v10, %v6491_v46 }
 0x34e   : > { %5999 = vmatprep.subr.bf16.mxu0 %v7724_v6  ;;  %v781_v62 = vcombine.low %v7740_v42, %v780_v37 }
 0x34f   : > { %v2674_v1 = vrot.slane %v2667_v38, %v6491_v46  ;;  %6010 = vmatpush3.bf16.msra.mxu1 %v3065_v52 }
 0x350   : > { %6011 = vmatprep.subr.bf16.mxu1 %v7724_v6  ;;  %v788_v12 = vrot.slane %v781_v62, %v6499_v53 }
 0x351   : > { %v2683_v26 = vcombine.low %v2666_v9, %v2674_v1  ;;  %6000 = vmatpush3.bf16.msra.mxu0 %v3053_v11 }
 0x352   : > { %6001 = vmatprep.subr.bf16.mxu0 %v7724_v6  ;;  %v815_v4 = vpack.i.b16 %v812_v55, %v788_v12  ;;  %v816_v7 = vshrl.u32 %v788_v12, 16 }
 0x353   : > { %v2690_v63 = vrot.slane %v2683_v26, %v6499_v53  ;;  %6012 = vmatpush3.bf16.msra.mxu1 %v3057_v29 }
 0x354   : > { %6013 = vmatprep.subr.bf16.mxu1 %v7724_v6  ;;  %v818_v35 = vpack.i.b16 %v817_v60, %v816_v7 }
 0x355   : > { %6002 = vmatpush3.bf16.msra.mxu0 %v3045_v48  ;;  %v2691_v28 = vcombine.low %v2682_v27, %v2690_v63 }
 0x356   : > { %6003 = vmatprep.subr.bf16.mxu0 %v7724_v6 }
 0x357   : > { %6014 = vmatpush3.bf16.msra.mxu1 %v3049_v25  ;;  %v3037_v23 = vpack.i.b16 %v2740_v39, %v2691_v28  ;;  %v3039_v30 = vshrl.u32 %v2691_v28, 16 }
 0x358   : > { %6015 = vmatprep.subr.bf16.mxu1 %v7724_v6 }
 0x359   : > { %6004 = vmatpush3.bf16.msra.mxu0 %v3037_v23  ;;  %v3041_v51 = vpack.i.b16 %v3040_v49, %v3039_v30 }
 0x35b   : > { %6016 = vmatpush3.bf16.msra.mxu1 %v3041_v51 }
 0x35c   : > { %6006 = vmatmul.mubr.msk.bf16.vlgmr.msra.gmra.mxu0 %vm3067_vm1, %v815_v4 }
 0x35e   : > { %6018 = vmatmul.mubr.msk.bf16.vlgmr.msra.gmra.mxu1 %vm3067_vm1, %v818_v35 }
 0x365   : > { %v679_v54 = vpop.permute.xlu0 %678 }
 0x366   : > { %v703_v3 = vrot.slane %v679_v54, %v6491_v46  ;;  %v696_v41 = vcombine.high %v679_v54, %v7724_v6 }
 0x368   : > { %v711_v43 = vcombine.low %v688_v31, %v703_v3  ;;  %v712_v5 = vcombine.high %v688_v31, %v703_v3  ;;  %v710_v19 = vrot.slane %v696_v41, %v6491_v46 }
 0x36a   : > { %v719_v47 = vrot.slane %v711_v43, %v6499_v53  ;;  %v726_v13 = vrot.slane %v712_v5, %v6499_v53  ;;  %v727_v56 = vcombine.low %v695_v57, %v710_v19  ;;  %v728_v24 = vcombine.high %v695_v57, %v710_v19 }
 0x36c   : > { %v747_v22 = vpack.c.bf16 %v719_v47, %v719_v47  ;;  %v743_v15 = vcombine.high %v719_v47, %v7724_v6  ;;  %v744_v45 = vcombine.high %v726_v13, %v7724_v6  ;;  %v749_v16 = vpack.c.bf16 %v726_v13, %v726_v13 }
 0x36d   : > { %v735_v36 = vrot.slane %v727_v56, %v6499_v53  ;;  %v742_v38 = vrot.slane %v728_v24, %v6499_v53 }
 0x36e   : > { %3183 = vxpose.xlu1.c.b16.start.end [1/1] (short) (narrow) %v747_v22, 64  ;;  %v748_v40 = vpack.c.bf16 %v743_v15, %v743_v15  ;;  %v750_v61 = vpack.c.bf16 %v744_v45, %v744_v45 }
 0x36f   : > { %v745_v44 = vcombine.high %v735_v36, %v7724_v6  ;;  %v751_v20 = vpack.c.bf16 %v735_v36, %v735_v36  ;;  %v746_v52 = vcombine.high %v742_v38, %v7724_v6  ;;  %v753_v21 = vpack.c.bf16 %v742_v38, %v742_v38 }
 0x370   : > { %3199 = vxpose.xlu0.c.b16.start.end [1/1] (short) (narrow) %v748_v40, 64 }
 0x371   : > { %v752_v32 = vpack.c.bf16 %v745_v44, %v745_v44  ;;  %v754_v8 = vpack.c.bf16 %v746_v52, %v746_v52 }
 0x37b   : > { %3215 = vxpose.xlu1.c.b16.start.end [1/1] (short) (narrow) %v749_v16, 64 }
 0x37d   : > { %3231 = vxpose.xlu0.c.b16.start.end [1/1] (short) (narrow) %v750_v61, 64 }
 0x388   : > { %3247 = vxpose.xlu1.c.b16.start.end [1/1] (short) (narrow) %v751_v20, 64 }
 0x38a   : > { %3263 = vxpose.xlu0.c.b16.start.end [1/1] (short) (narrow) %v752_v32, 64 }
 0x395   : > { %3279 = vxpose.xlu1.c.b16.start.end [1/1] (short) (narrow) %v753_v21, 64 }
 0x397   : > { %3295 = vxpose.xlu0.c.b16.start.end [1/1] (short) (narrow) %v754_v8, 64 }
 0x3d0   : > { %v3191_v2 = vpop.trf.xlu1 }
 0x3d1   : > { %v3315_v43 = vshrl.u32 %v3191_v2, 16 }
 0x3d2   : > { %v3207_v37 = vpop.trf.xlu0 }
 0x3d3   : > { %v3316_v3 = vshrl.u32 %v3207_v37, 16  ;;  %v7155_v16 = vpack.i.b16 %v3207_v37, %v3191_v2 }
 0x3d4   : > { %v7121_v14 = vpop.trf.xlu1 }
 0x3d5   : > { %v7161_v56 = vpack.i.b16 %v3316_v3, %v3315_v43 }
 0x3d6   : > { %v7123_v0 = vpop.trf.xlu0 }
 0x3d8   : > { %v3193_v34 = vpop.trf.xlu1 }
 0x3d9   : > { %v3379_v51 = vshrl.u32 %v3193_v34, 16 }
 0x3da   : > { %v3209_v17 = vpop.trf.xlu0 }
 0x3db   : > { %v3380_v60 = vshrl.u32 %v3209_v17, 16  ;;  %v7145_v54 = vpack.i.b16 %v3209_v17, %v3193_v34 }
 0x3dc   : > { %v3194_v9 = vpop.trf.xlu1 }
 0x3dd   : > { %v7149_v47 = vpack.i.b16 %v3380_v60, %v3379_v51  ;;  %v3411_v10 = vshrl.u32 %v3194_v9, 16 }
 0x3de   : > { %v3210_v1 = vpop.trf.xlu0 }
 0x3df   : > { %v3412_v41 = vshrl.u32 %v3210_v1, 16  ;;  %v7163_v36 = vpack.i.b16 %v3210_v1, %v3194_v9 }
 0x3e0   : > { %v7125_v11 = vpop.trf.xlu1 }
 0x3e1   : > { %v3323_v38 = vshrl.u32 %v7125_v11, 16  ;;  %v7171_v8 = vpack.i.b16 %v3412_v41, %v3411_v10 }
 0x3e2   : > { %v7127_v18 = vpop.trf.xlu0 }
 0x3e3   : > { %v3324_v24 = vshrl.u32 %v7127_v18, 16  ;;  %v3321_v9 = vpack.i.b16 %v7127_v18, %v7125_v11 }
 0x3e4   : > { %v7129_v58 = vpop.trf.xlu1 }
 0x3e6   : > { %v7131_v26 = vpop.trf.xlu0 }
 0x3e8   : > { %v3225_v29 = vpop.trf.xlu1 }
 0x3e9   : > { %v3387_v50 = vshrl.u32 %v3225_v29, 16 }
 0x3ea   : > { %v3241_v42 = vpop.trf.xlu0 }
 0x3eb   : > { %v3388_v62 = vshrl.u32 %v3241_v42, 16  ;;  %v7133_v27 = vpack.i.b16 %v3241_v42, %v3225_v29 }
 0x3ec   : > { %v3226_v63 = vpop.trf.xlu1 }
 0x3ed   : > { %v7135_v48 = vpack.i.b16 %v3388_v62, %v3387_v50  ;;  %v3419_v33 = vshrl.u32 %v3226_v63, 16 }
 0x3ee   : > { %v3242_v39 = vpop.trf.xlu0 }
 0x3ef   : > { %v3420_v55 = vshrl.u32 %v3242_v39, 16  ;;  %v7137_v25 = vpack.i.b16 %v3242_v39, %v3226_v63 }
 0x3f0   : > { %v3255_v28 = vpop.trf.xlu1 }
 0x3f1   : > { %v7139_v12 = vpack.i.b16 %v3420_v55, %v3419_v33  ;;  %v3331_v40 = vshrl.u32 %v3255_v28, 16  ;;  %v3325_v33 = vpack.i.b16 %v3324_v24, %v3323_v38 }
 0x3f2   : > { %v3271_v23 = vpop.trf.xlu0 }
 0x3f3   : > { %v3332_v15 = vshrl.u32 %v3271_v23, 16  ;;  %v7157_v57 = vpack.i.b16 %v3271_v23, %v3255_v28 }
 0x3f4   : > { %v7141_v30 = vpop.trf.xlu1 }
 0x3f5   : > { %v7169_v52 = vpack.i.b16 %v3332_v15, %v3331_v40  ;;  %v3439_v1 = vcombine.low %v7155_v16, %v7157_v57 }
 0x3f6   : > { %v7143_v49 = vpop.trf.xlu0 }
 0x3f7   : > { %v3507_v39 = vcombine.low %v7161_v56, %v7169_v52  ;;  %v3447_v18 = vrot.slane %v3439_v1, %v6491_v46 }
 0x3f8   : > { %v3257_v4 = vpop.trf.xlu1 }
 0x3f9   : > { %v3395_v7 = vshrl.u32 %v3257_v4, 16 }
 0x3fa   : > { %v3273_v35 = vpop.trf.xlu0 }
 0x3fb   : > { %v3396_v59 = vshrl.u32 %v3273_v35, 16  ;;  %v7147_v31 = vpack.i.b16 %v3273_v35, %v3257_v4  ;;  %v3515_v4 = vrot.slane %v3507_v39, %v6491_v46 }
 0x3fc   : > { %v3258_v22 = vpop.trf.xlu1 }
 0x3fd   : > { %v7151_v5 = vpack.i.b16 %v3396_v59, %v3395_v7  ;;  %v3712_v13 = vcombine.high %v7145_v54, %v7147_v31  ;;  %v3427_v19 = vshrl.u32 %v3258_v22, 16 }
 0x3fe   : > { %v3274_v45 = vpop.trf.xlu0 }
 0x3ff   : > { %v3780_v61 = vcombine.high %v7149_v47, %v7151_v5  ;;  %v3428_v44 = vshrl.u32 %v3274_v45, 16  ;;  %v7165_v20 = vpack.i.b16 %v3274_v45, %v3258_v22 }
 0x400   : > { %v3287_v32 = vpop.trf.xlu1 }
 0x401   : > { %v3339_v21 = vshrl.u32 %v3287_v32, 16  ;;  %v7173_v2 = vpack.i.b16 %v3428_v44, %v3427_v19  ;;  %v3847_v37 = vcombine.low %v7163_v36, %v7165_v20  ;;  %v3848_v34 = vcombine.high %v7163_v36, %v7165_v20 }
 0x402   : > { %v3303_v17 = vpop.trf.xlu0 }
 0x403   : > { %v3340_v29 = vshrl.u32 %v3303_v17, 16  ;;  %v3337_v50 = vpack.i.b16 %v3303_v17, %v3287_v32  ;;  %v3915_v42 = vcombine.low %v7171_v8, %v7173_v2  ;;  %v3916_v62 = vcombine.high %v7171_v8, %v7173_v2 }
 0x404   : > { %v7187_v63 = vpop.trf.xlu1 }
 0x405   : > { %v3341_v55 = vpack.i.b16 %v3340_v29, %v3339_v21  ;;  %v3455_v28 = vcombine.low %v3321_v9, %v3337_v50  ;;  %v3456_v19 = vcombine.high %v3321_v9, %v3337_v50  ;;  %v7203_v21 = vrot.slane %v3712_v13, %v6491_v46 }
 0x406   : > { %v7191_v11 = vpop.trf.xlu0  ;;  %v7742_v29 = vmov 0  }
 0x407   : > { %v3463_v23 = vrot.slane %v3455_v28, %v6491_v46  ;;  %v3523_v60 = vcombine.low %v3325_v33, %v3341_v55  ;;  %v3440_v28 = vcombine.high %v7155_v16, %v7157_v57  ;;  %v3348_v57 = vshrl.u32 %v7123_v0, 16 }
 0x408   : > { %v3289_v51 = vpop.trf.xlu1 }
 0x409   : > { %v3531_v7 = vrot.slane %v3523_v60, %v6491_v46  ;;  %v3403_v35 = vshrl.u32 %v3289_v51, 16  ;;  %v3471_v59 = vcombine.low %v3447_v18, %v3463_v23  ;;  %v3472_v38 = vcombine.high %v3447_v18, %v3463_v23 }
 0x40a   : > { %v3305_v3 = vpop.trf.xlu0  ;;  %v3347_v18 = vshrl.u32 %v7121_v14, 16  ;;  %v7219_v23 = vrot.slane %v3456_v19, %v6491_v46 }
 0x40b   : > { %v3404_v43 = vshrl.u32 %v3305_v3, 16  ;;  %v3401_v22 = vpack.i.b16 %v3305_v3, %v3289_v51  ;;  %v3479_v15 = vrot.slane %v3471_v59, %v6499_v53  ;;  %v3539_v40 = vcombine.low %v3515_v4, %v3531_v7 }
 0x40c   : > { %v3290_v41 = vpop.trf.xlu1  ;;  %v3486_v16 = vrot.slane %v3472_v38, %v6499_v53  ;;  %v3540_v3 = vcombine.high %v3515_v4, %v3531_v7  ;;  %v3371_v38 = vshrl.u32 %v7187_v63, 16 }
 0x40d   : > { %v7198_v10 = vpack.i.b16 %v3404_v43, %v3403_v35  ;;  %v3728_v45 = vcombine.high %v7133_v27, %v3401_v22  ;;  %3983 = vxpose.xlu1.c.b16.start.end [1/1] (short) (narrow) %v3479_v15, 16  ;;  %v3435_v32 = vshrl.u32 %v3290_v41, 16  ;;  %v3547_v24 = vrot.slane %v3539_v40, %v6499_v53 }
 0x40e   : > { %v3306_v44 = vpop.trf.xlu0  ;;  %v3503_v39 = vcombine.high %v3479_v15, %v7742_v29  ;;  %v3524_v35 = vcombine.high %v3325_v33, %v3341_v55  ;;  %v7229_v43 = vrot.slane %v3440_v28, %v6491_v46  ;;  %v7232_v15 = vrot.slane %v3848_v34, %v6491_v46 }
 0x40f   : > { %v7206_v17 = vrot.slane %v3728_v45, %v6491_v46  ;;  %v3796_v1 = vcombine.high %v7135_v48, %v7198_v10  ;;  %v3436_v9 = vshrl.u32 %v3306_v44, 16  ;;  %v7213_v50 = vpack.i.b16 %v3306_v44, %v3290_v41  ;;  %3999 = vxpose.xlu0.c.b16.start.end [1/1] (short) (narrow) %v3547_v24, 16 }
 0x410   : > { %v3571_v59 = vcombine.high %v3547_v24, %v7742_v29  ;;  %v7241_v45 = vpack.i.b16 %v7123_v0, %v7121_v14  ;;  %v3508_v33 = vcombine.high %v7161_v56, %v7169_v52  ;;  %v3727_v55 = vcombine.low %v7133_v27, %v3401_v22 }
 0x411   : > { %v3759_v13 = vcombine.low %v7203_v21, %v7206_v17  ;;  %4015 = vxpose.xlu1.c.b16.start.end [1/1] (short) (narrow) %v3503_v39, 16  ;;  %v7221_v60 = vpack.i.b16 %v3436_v9, %v3435_v32  ;;  %v3864_v51 = vcombine.high %v7137_v25, %v7213_v50  ;;  %v3795_v34 = vcombine.low %v7135_v48, %v7198_v10 }
 0x412   : > { %v3504_v7 = vcombine.high %v3486_v16, %v7742_v29  ;;  %v3487_v19 = vcombine.low %v7229_v43, %v7219_v23  ;;  %v7253_v44 = vpack.i.b16 %v3348_v57, %v3347_v18  ;;  %v3355_v14 = vshrl.u32 %v7129_v58, 16 }
 0x413   : > { %v7235_v40 = vrot.slane %v3864_v51, %v6491_v46  ;;  %v3932_v41 = vcombine.high %v7139_v12, %v7221_v60  ;;  %4047 = vxpose.xlu0.c.b16.start.end [1/1] (short) (narrow) %v3486_v16, 16  ;;  %v7257_v0 = vrot.slane %v3524_v35, %v6491_v46  ;;  %v3554_v27 = vrot.slane %v3540_v3, %v6499_v53 }
 0x414   : > { %v3356_v56 = vshrl.u32 %v7131_v26, 16  ;;  %v7263_v48 = vpack.i.b16 %v7131_v26, %v7129_v58  ;;  %v3711_v52 = vcombine.low %v7145_v54, %v7147_v31  ;;  %v3779_v22 = vcombine.low %v7149_v47, %v7151_v5 }
 0x415   : > { %4031 = vxpose.xlu1.c.b16.start.end [1/1] (short) (narrow) %v3571_v59, 16  ;;  %v3895_v4 = vcombine.low %v7232_v15, %v7235_v40  ;;  %v7270_v10 = vrot.slane %v3508_v33, %v6491_v46  ;;  %v3372_v32 = vshrl.u32 %v7191_v11, 16  ;;  %v7275_v24 = vpack.i.b16 %v7191_v11, %v7187_v63 }
 0x416   : > { %v3363_v58 = vshrl.u32 %v7141_v30, 16  ;;  %v7280_v26 = vrot.slane %v3727_v55, %v6491_v46  ;;  %v7283_v54 = vrot.slane %v3795_v34, %v6491_v46  ;;  %v3495_v31 = vrot.slane %v3487_v19, %v6499_v53 }
 0x417   : > { %4079 = vxpose.xlu0.c.b16.start.end [1/1] (short) (narrow) %v3504_v7, 16  ;;  %v3364_v39 = vshrl.u32 %v7143_v49, 16  ;;  %v7289_v28 = vpack.i.b16 %v7143_v49, %v7141_v30  ;;  %v3572_v11 = vcombine.high %v3554_v27, %v7742_v29  ;;  %v3555_v63 = vcombine.low %v7270_v10, %v7257_v0 }
 0x418   : > { %v7295_v9 = vrot.slane %v3711_v52, %v6491_v46  ;;  %v7298_v18 = vrot.slane %v3779_v22, %v6491_v46  ;;  %v3863_v51 = vcombine.low %v7137_v25, %v7213_v50  ;;  %v3931_v16 = vcombine.low %v7139_v12, %v7221_v60 }
 0x419   : > { %4063 = vxpose.xlu1.c.b16.start.end [1/1] (short) (narrow) %v3554_v27, 16  ;;  %v7306_v49 = vpack.i.b16 %v3372_v32, %v3371_v38  ;;  %v3591_v57 = vcombine.low %v7263_v48, %v7275_v24  ;;  %v7311_v35 = vrot.slane %v3796_v1, %v6491_v46  ;;  %v3488_v59 = vcombine.high %v7229_v43, %v7219_v23 }
 0x41a   : > { %v3505_v50 = vcombine.high %v3495_v31, %v7742_v29  ;;  %v3743_v33 = vcombine.low %v7295_v9, %v7280_v26  ;;  %v3811_v55 = vcombine.low %v7298_v18, %v7283_v54  ;;  %v3744_v34 = vcombine.high %v7295_v9, %v7280_v26 }
 0x41b   : > { %4111 = vxpose.xlu0.c.b16.start.end [1/1] (short) (narrow) %v3495_v31, 16  ;;  %v7324_v1 = vpack.i.b16 %v3356_v56, %v3355_v14  ;;  %v7326_v7 = vpack.i.b16 %v3364_v39, %v3363_v58  ;;  %v3563_v23 = vrot.slane %v3555_v63, %v6499_v53  ;;  %v3812_v43 = vcombine.high %v7298_v18, %v7283_v54 }
 0x41c   : > { %v7304_v30 = vpop.f32.mrf.mxu0  ;;  %v3575_v19 = vcombine.low %v7241_v45, %v7289_v28  ;;  %v7337_v27 = vrot.slane %v3780_v61, %v6491_v46  ;;  %v7340_v52 = vrot.slane %v3863_v51, %v6491_v46  ;;  %v7343_v14 = vrot.slane %v3931_v16, %v6491_v46 }
 0x41d   : > { %4095 = vxpose.xlu1.c.b16.start.end [1/1] (short) (narrow) %v3572_v11, 16  ;;  %v7349_v32 = vrot.slane %v3847_v37, %v6491_v46  ;;  %v7355_v47 = vrot.slane %v3915_v42, %v6491_v46  ;;  %v7361_v5 = vrot.slane %v3916_v62, %v6491_v46  ;;  %v7367_v61 = vrot.slane %v3932_v41, %v6491_v46 }
 0x41e   : > { %v6007_v3 = vpop.f32.mrf.mxu0  ;;  %v7315_v25 = vpop.f32.mrf.mxu1  ;;  %v3599_v36 = vrot.slane %v3591_v57, %v6491_v46  ;;  %v3659_v20 = vcombine.low %v7324_v1, %v7306_v49  ;;  %v3502_v38 = vrot.slane %v3488_v59, %v6499_v53  ;;  %v3827_v8 = vcombine.low %v7337_v27, %v7311_v35 }
 0x41f   : > { %4143 = vxpose.xlu0.c.b16.start.end [1/1] (short) (narrow) %v3505_v50, 16  ;;  %v3573_v2 = vcombine.high %v3563_v23, %v7742_v29  ;;  %v3556_v12 = vcombine.high %v7270_v10, %v7257_v0  ;;  %v3760_v62 = vcombine.high %v7203_v21, %v7206_v17  ;;  %v3828_v60 = vcombine.high %v7337_v27, %v7311_v35 }
 0x420   : > { %v3108_v56 = vpop.f32.mrf.mxu0  ;;  %v6019_v22 = vpop.f32.mrf.mxu1  ;;  %v3583_v41 = vrot.slane %v3575_v19, %v6491_v46  ;;  %v3879_v31 = vcombine.low %v7349_v32, %v7340_v52  ;;  %v3947_v39 = vcombine.low %v7355_v47, %v7343_v14  ;;  %v3880_v11 = vcombine.high %v7349_v32, %v7340_v52 }
 0x421   : > { %4127 = vxpose.xlu1.c.b16.start.end [1/1] (short) (narrow) %v3563_v23, 16  ;;  %v3643_v0 = vcombine.low %v7253_v44, %v7326_v7  ;;  %v3948_v10 = vcombine.high %v7355_v47, %v7343_v14  ;;  %v3963_v63 = vcombine.low %v7361_v5, %v7367_v61  ;;  %v3506_v51 = vcombine.high %v3502_v38, %v7742_v29 }
 0x422   : > { %v6008_v37 = vpop.f32.mrf.mxu0  ;;  %v3151_v42 = vpop.f32.mrf.mxu1  ;;  %v3607_v16 = vcombine.low %v3583_v41, %v3599_v36  ;;  %v3667_v57 = vrot.slane %v3659_v20, %v6491_v46  ;;  %v3570_v59 = vrot.slane %v3556_v12, %v6499_v53  ;;  %v3964_v50 = vcombine.high %v7361_v5, %v7367_v61 }
 0x423   : > { %4175 = vxpose.xlu0.c.b16.start.end [1/1] (short) (narrow) %v3502_v38, 16  ;;  %v3651_v3 = vrot.slane %v3643_v0, %v6491_v46  ;;  %v3896_v23 = vcombine.high %v7232_v15, %v7235_v40  ;;  %v3592_v20 = vcombine.high %v7263_v48, %v7275_v24  ;;  %v3608_v42 = vcombine.high %v3583_v41, %v3599_v36 }
 0x424   : > { %v6020_v58 = vpop.f32.mrf.mxu1  ;;  %v3615_v19 = vrot.slane %v3607_v16, %v6499_v53  ;;  %v3574_v56 = vcombine.high %v3570_v59, %v7742_v29  ;;  %v3660_v0 = vcombine.high %v7324_v1, %v7306_v49  ;;  %v3644_v36 = vcombine.high %v7253_v44, %v7326_v7 }
 0x425   : > { %4159 = vxpose.xlu1.c.b16.start.end [1/1] (short) (narrow) %v3573_v2, 16  ;;  %v3675_v22 = vcombine.low %v3651_v3, %v3667_v57  ;;  %v3576_v2 = vcombine.high %v7241_v45, %v7289_v28  ;;  %v3606_v12 = vrot.slane %v3592_v20, %v6491_v46  ;;  %v3622_v58 = vrot.slane %v3608_v42, %v6499_v53 }
 0x426   : > { %v3639_v37 = vcombine.high %v3615_v19, %v7742_v29  ;;  %v3676_v48 = vcombine.high %v3651_v3, %v3667_v57  ;;  %v3674_v41 = vrot.slane %v3660_v0, %v6491_v46  ;;  %v3658_v49 = vrot.slane %v3644_v36, %v6491_v46  ;;  %v7744_v36 = vld [vmem:[#allocation14_spill] sm:$0xff] }
 0x427   : > { %4207 = vxpose.xlu0.c.b16.start.end [1/1] (short) (narrow) %v3506_v51, 16  ;;  %v3683_v38 = vrot.slane %v3675_v22, %v6499_v53  ;;  %v3590_v24 = vrot.slane %v3576_v2, %v6491_v46  ;;  %v3640_v45 = vcombine.high %v3622_v58, %v7742_v29  ;;  %v3751_v42 = vrot.slane %v3743_v33, %v6499_v53 }
 0x428   : > { %v3690_v16 = vrot.slane %v3676_v48, %v6499_v53  ;;  %v3692_v22 = vcombine.high %v3658_v49, %v3674_v41  ;;  %v7743_v33 = vlaneseq  ;;  %v760_v48 = vstv %s759_s12 }
 0x429   : > { %4191 = vxpose.xlu1.c.b16.start.end [1/1] (short) (narrow) %v3570_v59, 16  ;;  %v3707_v51 = vcombine.high %v3683_v38, %v7742_v29  ;;  %v3623_v28 = vcombine.low %v3590_v24, %v3606_v12  ;;  %v3691_v59 = vcombine.low %v3658_v49, %v3674_v41  ;;  %v3624_v7 = vcombine.high %v3590_v24, %v3606_v12 }
 0x42a   : > { %v3708_v57 = vcombine.high %v3690_v16, %v7742_v29  ;;  %v3775_v2 = vcombine.high %v3751_v42, %v7742_v29  ;;  %v3819_v12 = vrot.slane %v3811_v55, %v6499_v53  ;;  %v756_v0 = vand.u32 127, %v7743_v33 }
 0x42b   : > { %4239 = vxpose.xlu0.c.b16.start.end [1/1] (short) (narrow) %v3615_v19, 16  ;;  %v3631_v1 = vrot.slane %v3623_v28, %v6499_v53  ;;  %v3699_v3 = vrot.slane %v3691_v59, %v6499_v53  ;;  %v3638_v19 = vrot.slane %v3624_v7, %v6499_v53  ;;  %v3826_v55 = vrot.slane %v3812_v43, %v6499_v53 }
 0x42c   : > { %vm761_vm2 = vcmp.ge.s32.totalorder %v756_v0, %v760_v48  ;;  %vm762_vm3 = vcmp.gt.s32.totalorder %v756_v0, %v7744_v36  ;;  %v3154_v9 = vmul.f32 0.125, %v7304_v30  ;;  %v3155_v28 = vmul.f32 0.125, %v7315_v25 }
 0x42d   : > { %4223 = vxpose.xlu1.c.b16.start.end [1/1] (short) (narrow) %v3574_v56, 16  ;;  %v3641_v44 = vcombine.high %v3631_v1, %v7742_v29  ;;  %v3709_v56 = vcombine.high %v3699_v3, %v7742_v29  ;;  %v3642_v20 = vcombine.high %v3638_v19, %v7742_v29  ;;  %vm763_vm4 = vmor %vm761_vm2, %vm762_vm3  ;;  %v3844_v26 = vcombine.high %v3826_v55, %v7742_v29 }
 0x42e   : > { %v3842_v17 = vrot.slane %v3828_v60, %v6499_v53 }
 0x42f   : > { %4271 = vxpose.xlu0.c.b16.start.end [1/1] (short) (narrow) %v3639_v37, 16  ;;  %v3706_v37 = vrot.slane %v3692_v22, %v6499_v53 }
 0x430   : > { %v3846_v35 = vcombine.high %v3842_v17, %v7742_v29 }
 0x431   : > { %4255 = vxpose.xlu1.c.b16.start.end [1/1] (short) (narrow) %v3683_v38, 16  ;;  %v3710_v38 = vcombine.high %v3706_v37, %v7742_v29 }
 0x433   : > { %4303 = vxpose.xlu0.c.b16.start.end [1/1] (short) (narrow) %v3622_v58, 16  ;;  %v3758_v58 = vrot.slane %v3744_v34, %v6499_v53  ;;  %v764_v34 = vsel %vm763_vm4, -1e+09, %v7724_v6 }
 0x434   : > { %v7462_v54 = vadd.f32 %v3155_v28, %v764_v34 }
 0x435   : > { %4287 = vxpose.xlu1.c.b16.start.end [1/1] (short) (narrow) %v3707_v51, 16  ;;  %v3843_v51 = vcombine.high %v3819_v12, %v7742_v29  ;;  %v3776_v24 = vcombine.high %v3758_v58, %v7742_v29 }
 0x436   : > { %v3162_v18 = vsel %vm3158_vm5, %v7462_v54, -inf }
 0x437   : > { %4335 = vxpose.xlu0.c.b16.start.end [1/1] (short) (narrow) %v3640_v45, 16  ;;  %v7457_v45 = vadd.f32 %v3154_v9, %v764_v34  ;;  %v3767_v34 = vrot.slane %v3759_v13, %v6499_v53 }
 0x439   : > { %4319 = vxpose.xlu1.c.b16.start.end [1/1] (short) (narrow) %v3690_v16, 16  ;;  %v3159_v41 = vsel %vm3158_vm5, %v7457_v45, -inf }
 0x43b   : > { %4367 = vxpose.xlu0.c.b16.start.end [1/1] (short) (narrow) %v3631_v1, 16 }
 0x43d   : > { %4351 = vxpose.xlu1.c.b16.start.end [1/1] (short) (narrow) %v3708_v57, 16 }
 0x43f   : > { %4399 = vxpose.xlu0.c.b16.start.end [1/1] (short) (narrow) %v3641_v44, 16 }
 0x441   : > { %4383 = vxpose.xlu1.c.b16.start.end [1/1] (short) (narrow) %v3699_v3, 16 }
 0x443   : > { %4431 = vxpose.xlu0.c.b16.start.end [1/1] (short) (narrow) %v3638_v19, 16 }
 0x445   : > { %4415 = vxpose.xlu1.c.b16.start.end [1/1] (short) (narrow) %v3709_v56, 16 }
 0x447   : > { %4463 = vxpose.xlu0.c.b16.start.end [1/1] (short) (narrow) %v3642_v20, 16 }
 0x449   : > { %4447 = vxpose.xlu1.c.b16.start.end [1/1] (short) (narrow) %v3706_v37, 16 }
 0x44b   : > { %4495 = vxpose.xlu0.c.b16.start.end [1/1] (short) (narrow) %v3751_v42, 16 }
 0x44d   : > { %4479 = vxpose.xlu1.c.b16.start.end [1/1] (short) (narrow) %v3710_v38, 16 }
 0x44f   : > { %4527 = vxpose.xlu0.c.b16.start.end [1/1] (short) (narrow) %v3775_v2, 16 }
 0x451   : > { %4511 = vxpose.xlu1.c.b16.start.end [1/1] (short) (narrow) %v3819_v12, 16 }
 0x453   : > { %4559 = vxpose.xlu0.c.b16.start.end [1/1] (short) (narrow) %v3758_v58, 16 }
 0x455   : > { %4543 = vxpose.xlu1.c.b16.start.end [1/1] (short) (narrow) %v3843_v51, 16 }
 0x457   : > { %4591 = vxpose.xlu0.c.b16.start.end [1/1] (short) (narrow) %v3776_v24, 16 }
 0x459   : > { %4575 = vxpose.xlu1.c.b16.start.end [1/1] (short) (narrow) %v3826_v55, 16 }
 0x45d   : > { %4607 = vxpose.xlu1.c.b16.start.end [1/1] (short) (narrow) %v3844_v26, 16 }
 0x464   : > { %3160 = vmax.xlane.f32.xlu0 %v3159_v41 }
 0x46a   : > { %3163 = vmax.xlane.f32.xlu1 %v3162_v18 }
 0x46f   : > { %v3991_v43 = vpop.trf.xlu1 }
 0x471   : > { %v4007_v30 = vpop.trf.xlu0 }
 0x473   : > { %v4023_v16 = vpop.trf.xlu1 }
 0x475   : > { %v4055_v49 = vpop.trf.xlu0 }
 0x476   : > { %v5007_v19 = vcombine.low %v3991_v43, %v4055_v49 }
 0x477   : > { %v4039_v1 = vpop.trf.xlu1 }
 0x478   : > { %v5014_v42 = vrot.slane %v5007_v19, %v6491_v46 }
 0x479   : > { %v4087_v57 = vpop.trf.xlu0 }
 0x47a   : > { %v5015_v56 = vcombine.low %v4023_v16, %v4087_v57 }
 0x47b   : > { %v4071_v59 = vpop.trf.xlu1 }
 0x47c   : > { %v5056_v38 = vcombine.low %v4007_v30, %v4071_v59  ;;  %v5022_v2 = vrot.slane %v5015_v56, %v6491_v46 }
 0x47d   : > { %v4119_v44 = vpop.trf.xlu0 }
 0x47e   : > { %v5063_v48 = vrot.slane %v5056_v38, %v6491_v46  ;;  %v5039_v24 = vcombine.low %v5014_v42, %v5022_v2 }
 0x47f   : > { %v4103_v25 = vpop.trf.xlu1 }
 0x480   : > { %v5064_v12 = vcombine.low %v4039_v1, %v4103_v25  ;;  %v5046_v18 = vrot.slane %v5039_v24, %v6499_v53  ;;  %v3777_v25 = vcombine.high %v3767_v34, %v7742_v29 }
 0x481   : > { %v4151_v7 = vpop.trf.xlu0 }
 0x482   : > { %v5071_v36 = vrot.slane %v5064_v12, %v6491_v46 }
 0x483   : > { %v4135_v3 = vpop.trf.xlu1 }
 0x484   : > { %v5088_v43 = vcombine.low %v5063_v48, %v5071_v36 }
 0x485   : > { %v4183_v22 = vpop.trf.xlu0 }
 0x486   : > { %v5023_v37 = vcombine.low %v4119_v44, %v4183_v22  ;;  %v5095_v44 = vrot.slane %v5088_v43, %v6499_v53 }
 0x487   : > { %v4167_v20 = vpop.trf.xlu1 }
 0x488   : > { %v5030_v33 = vrot.slane %v5023_v37, %v6491_v46  ;;  %v3774_v37 = vrot.slane %v3760_v62, %v6499_v53 }
 0x489   : > { %v4215_v58 = vpop.trf.xlu0 }
 0x48a   : > { %v5031_v51 = vcombine.low %v4151_v7, %v4215_v58  ;;  %v3778_v48 = vcombine.high %v3774_v37, %v7742_v29 }
 0x48b   : > { %v4199_v0 = vpop.trf.xlu1 }
 0x48c   : > { %v5072_v55 = vcombine.low %v4135_v3, %v4199_v0  ;;  %v5038_v26 = vrot.slane %v5031_v51, %v6491_v46  ;;  %v3835_v3 = vrot.slane %v3827_v8, %v6499_v53 }
 0x48d   : > { %v4247_v9 = vpop.trf.xlu0 }
 0x48e   : > { %v5047_v28 = vcombine.low %v5030_v33, %v5038_v26  ;;  %v5079_v30 = vrot.slane %v5072_v55, %v6491_v46  ;;  %v3845_v2 = vcombine.high %v3835_v3, %v7742_v29 }
 0x48f   : > { %v4231_v41 = vpop.trf.xlu1 }
 0x490   : > { %v5080_v16 = vcombine.low %v4167_v20, %v4231_v41  ;;  %v5054_v49 = vrot.slane %v5047_v28, %v6499_v53 }
 0x491   : > { %4623 = vxpose.xlu0.c.b16.start.end [1/1] (short) (narrow) %v3767_v34, 16  ;;  %v4279_v57 = vpop.trf.xlu0 }
 0x492   : > { %v5087_v1 = vrot.slane %v5080_v16, %v6491_v46  ;;  %v5055_v13 = vcombine.low %v5046_v18, %v5054_v49 }
 0x493   : > { %v4263_v59 = vpop.trf.xlu1 }
 0x494   : > { %v5096_v7 = vcombine.low %v5079_v30, %v5087_v1  ;;  %v5402_v38 = vshrl.u32 %v5055_v13, 16  ;;  %v3955_v30 = vrot.slane %v3947_v39, %v6499_v53  ;;  %v3894_v1 = vrot.slane %v3880_v11, %v6499_v53 }
 0x495   : > { %4655 = vxpose.xlu0.c.b16.start.end [1/1] (short) (narrow) %v3777_v25, 16  ;;  %v4311_v56 = vpop.trf.xlu0 }
 0x496   : > { %v5103_v19 = vrot.slane %v5096_v7, %v6499_v53  ;;  %v5105_v20 = vcombine.low %v4247_v9, %v4311_v56  ;;  %v3887_v9 = vrot.slane %v3879_v31, %v6499_v53  ;;  %v3912_v39 = vcombine.high %v3894_v1, %v7742_v29 }
 0x497   : > { %4639 = vxpose.xlu1.c.b16.start.end [1/1] (short) (narrow) %v3835_v3, 16  ;;  %v4295_v22 = vpop.trf.xlu1  ;;  %v3962_v3 = vrot.slane %v3948_v10, %v6499_v53 }
 0x498   : > { %v5104_v42 = vcombine.low %v5095_v44, %v5103_v19  ;;  %v5112_v33 = vrot.slane %v5105_v20, %v6491_v46  ;;  %v3911_v18 = vcombine.high %v3887_v9, %v7742_v29 }
 0x499   : > { %4687 = vxpose.xlu0.c.b16.start.end [1/1] (short) (narrow) %v3774_v37, 16  ;;  %v4343_v8 = vpop.trf.xlu0  ;;  %v3980_v37 = vcombine.high %v3962_v3, %v7742_v29 }
 0x49a   : > { %v5401_v12 = vpack.i.b16 %v5104_v42, %v5055_v13  ;;  %v5403_v58 = vshrl.u32 %v5104_v42, 16  ;;  %v5113_v51 = vcombine.low %v4279_v57, %v4343_v8  ;;  %v3979_v57 = vcombine.high %v3955_v30, %v7742_v29 }
 0x49b   : > { %4671 = vxpose.xlu1.c.b16.start.end [1/1] (short) (narrow) %v3845_v2, 16  ;;  %v4327_v0 = vpop.trf.xlu1 }
 0x49c   : > { %6023 = vmatprep.mubr.msk.bf16.mxu0 %vm3158_vm5, %v5401_v12  ;;  %v5404_v24 = vpack.i.b16 %v5403_v58, %v5402_v38  ;;  %v5154_v21 = vcombine.low %v4263_v59, %v4327_v0  ;;  %v5120_v62 = vrot.slane %v5113_v51, %v6491_v46 }
 0x49d   : > { %4719 = vxpose.xlu0.c.b16.start.end [1/1] (short) (narrow) %v3778_v48, 16  ;;  %v4375_v36 = vpop.trf.xlu0 }
 0x49e   : > { %6033 = vmatprep.mubr.msk.bf16.mxu1 %vm3158_vm5, %v5404_v24  ;;  %v5137_v55 = vcombine.low %v5112_v33, %v5120_v62  ;;  %v5161_v34 = vrot.slane %v5154_v21, %v6491_v46 }
 0x49f   : > { %4703 = vxpose.xlu1.c.b16.start.end [1/1] (short) (narrow) %v3842_v17, 16  ;;  %v4359_v26 = vpop.trf.xlu1 }
 0x4a0   : > { %v5162_v28 = vcombine.low %v4295_v22, %v4359_v26  ;;  %v5144_v11 = vrot.slane %v5137_v55, %v6499_v53 }
 0x4a1   : > { %4751 = vxpose.xlu0.c.b16.start.end [1/1] (short) (narrow) %v3887_v9, 16  ;;  %v4407_v60 = vpop.trf.xlu0 }
 0x4a2   : > { %v5169_v27 = vrot.slane %v5162_v28, %v6491_v46 }
 0x4a3   : > { %4735 = vxpose.xlu1.c.b16.start.end [1/1] (short) (narrow) %v3846_v35, 16  ;;  %v4391_v41 = vpop.trf.xlu1 }
 0x4a4   : > { %v5186_v43 = vcombine.low %v5161_v34, %v5169_v27 }
 0x4a5   : > { %4783 = vxpose.xlu0.c.b16.start.end [1/1] (short) (narrow) %v3911_v18, 16  ;;  %v4439_v31 = vpop.trf.xlu0 }
 0x4a6   : > { %v5121_v49 = vcombine.low %v4375_v36, %v4439_v31  ;;  %v5193_v2 = vrot.slane %v5186_v43, %v6499_v53 }
 0x4a7   : > { %4767 = vxpose.xlu1.c.b16.start.end [1/1] (short) (narrow) %v3955_v30, 16  ;;  %v4423_v16 = vpop.trf.xlu1 }
 0x4a8   : > { %v5128_v44 = vrot.slane %v5121_v49, %v6491_v46 }
 0x4a9   : > { %4815 = vxpose.xlu0.c.b16.start.end [1/1] (short) (narrow) %v3894_v1, 16  ;;  %v4471_v59 = vpop.trf.xlu0 }
 0x4aa   : > { %v5129_v13 = vcombine.low %v4407_v60, %v4471_v59 }
 0x4ab   : > { %4799 = vxpose.xlu1.c.b16.start.end [1/1] (short) (narrow) %v3979_v57, 16  ;;  %v4455_v25 = vpop.trf.xlu1 }
 0x4ac   : > { %v5170_v7 = vcombine.low %v4391_v41, %v4455_v25  ;;  %v5136_v52 = vrot.slane %v5129_v13, %v6491_v46 }
 0x4ad   : > { %4847 = vxpose.xlu0.c.b16.start.end [1/1] (short) (narrow) %v3912_v39, 16  ;;  %v4503_v32 = vpop.trf.xlu0 }
 0x4ae   : > { %v5145_v19 = vcombine.low %v5128_v44, %v5136_v52  ;;  %v5177_v22 = vrot.slane %v5170_v7, %v6491_v46 }
 0x4af   : > { %4831 = vxpose.xlu1.c.b16.start.end [1/1] (short) (narrow) %v3962_v3, 16  ;;  %v4487_v56 = vpop.trf.xlu1 }
 0x4b0   : > { %v5178_v20 = vcombine.low %v4423_v16, %v4487_v56  ;;  %v5152_v42 = vrot.slane %v5145_v19, %v6499_v53 }
 0x4b1   : > { %v4535_v14 = vpop.trf.xlu0 }
 0x4b2   : > { %v5185_v38 = vrot.slane %v5178_v20, %v6491_v46  ;;  %v7530_v47 = vcombine.low %v5144_v11, %v5152_v42 }
 0x4b3   : > { %4863 = vxpose.xlu1.c.b16.start.end [1/1] (short) (narrow) %v3980_v37, 16  ;;  %v4519_v10 = vpop.trf.xlu1 }
 0x4b4   : > { %v5194_v12 = vcombine.low %v5177_v22, %v5185_v38  ;;  %v5408_v51 = vshrl.u32 %v7530_v47, 16 }
 0x4b5   : > { %v4567_v8 = vpop.trf.xlu0 }
 0x4b6   : > { %v5201_v58 = vrot.slane %v5194_v12, %v6499_v53  ;;  %v5203_v0 = vcombine.low %v4503_v32, %v4567_v8 }
 0x4b7   : > { %v4551_v33 = vpop.trf.xlu1 }
 0x4b8   : > { %v7535_v48 = vcombine.low %v5193_v2, %v5201_v58  ;;  %v5210_v62 = vrot.slane %v5203_v0, %v6491_v46 }
 0x4b9   : > { %v4599_v17 = vpop.trf.xlu0 }
 0x4ba   : > { %v5407_v24 = vpack.i.b16 %v7535_v48, %v7530_v47  ;;  %v5409_v21 = vshrl.u32 %v7535_v48, 16  ;;  %v5211_v55 = vcombine.low %v4535_v14, %v4599_v17 }
 0x4bb   : > { %v4583_v36 = vpop.trf.xlu1 }
 0x4bc   : > { %v5252_v26 = vcombine.low %v4519_v10, %v4583_v36  ;;  %v7541_v9 = vpack.i.b16 %v5409_v21, %v5408_v51  ;;  %v5218_v34 = vrot.slane %v5211_v55, %v6491_v46  ;;  %v3971_v36 = vrot.slane %v3963_v63, %v6499_v53 }
 0x4be   : > { %v5235_v28 = vcombine.low %v5210_v62, %v5218_v34  ;;  %v5259_v27 = vrot.slane %v5252_v26, %v6491_v46  ;;  %v3981_v55 = vcombine.high %v3971_v36, %v7742_v29  ;;  %v3903_v26 = vrot.slane %v3895_v4, %v6499_v53 }
 0x4bf   : > { %v4615_v35 = vpop.trf.xlu1  ;;  %v3978_v34 = vrot.slane %v3964_v50, %v6499_v53 }
 0x4c0   : > { %v5260_v60 = vcombine.low %v4551_v33, %v4615_v35  ;;  %v5242_v2 = vrot.slane %v5235_v28, %v6499_v53  ;;  %v3913_v28 = vcombine.high %v3903_v26, %v7742_v29  ;;  %v3910_v35 = vrot.slane %v3896_v23, %v6499_v53 }
 0x4c1   : > { %v3982_v63 = vcombine.high %v3978_v34, %v7742_v29 }
 0x4c2   : > { %v5267_v41 = vrot.slane %v5260_v60, %v6491_v46  ;;  %v3914_v4 = vcombine.high %v3910_v35, %v7742_v29 }
 0x4c4   : > { %v5284_v18 = vcombine.low %v5259_v27, %v5267_v41 }
 0x4c6   : > { %v5291_v58 = vrot.slane %v5284_v18, %v6499_v53 }
 0x4ed   : > { %v3161_v43 = vpop.xlane.xlu0 %3160 }
 0x4ee   : > { %v3165_v30 = vsub.f32 %v7457_v45, %v3161_v43 }
 0x4f0   : > { %v3167_v31 = vmul.f32 1.442695, %v3165_v30 }
 0x4f2   : > { %6141 = vpow2.f32 %v3167_v31 }
 0x4f3   : > { %v3164_v16 = vpop.xlane.xlu1 %3163  ;;  %v4631_v1 = vpop.trf.xlu0 }
 0x4f4   : > { %v3166_v49 = vsub.f32 %v7462_v54, %v3164_v16 }
 0x4f6   : > { %v3169_v57 = vmul.f32 1.442695, %v3166_v49 }
 0x4f7   : > { %v4663_v59 = vpop.trf.xlu0 }
 0x4f8   : > { %6143 = vpow2.f32 %v3169_v57 }
 0x4f9   : > { %v4647_v44 = vpop.trf.xlu1 }
 0x4fb   : > { %v4695_v25 = vpop.trf.xlu0 }
 0x4fc   : > { %v5219_v13 = vcombine.low %v4631_v1, %v4695_v25 }
 0x4fd   : > { %v4679_v39 = vpop.trf.xlu1 }
 0x4fe   : > { %v5226_v52 = vrot.slane %v5219_v13, %v6491_v46 }
 0x4ff   : > { %v6142_v7 = vpop.eup %6141  ;;  %v4727_v3 = vpop.trf.xlu0 }
 0x500   : > { %v5227_v32 = vcombine.low %v4663_v59, %v4727_v3  ;;  %v3171_v45 = vsel %vm3158_vm5, %v6142_v7, 0.0 }
 0x501   : > { %v4711_v11 = vpop.trf.xlu1  ;;  %3172 = vadd.xlane.f32.xlu1 %v3171_v45 }
 0x502   : > { %v5268_v19 = vcombine.low %v4647_v44, %v4711_v11  ;;  %v5234_v54 = vrot.slane %v5227_v32, %v6491_v46 }
 0x503   : > { %v4759_v60 = vpop.trf.xlu0 }
 0x504   : > { %v5243_v22 = vcombine.low %v5226_v52, %v5234_v54  ;;  %v5275_v37 = vrot.slane %v5268_v19, %v6491_v46 }
 0x505   : > { %v7551_v56 = vpop.eup %6143  ;;  %v4743_v20 = vpop.trf.xlu1 }
 0x506   : > { %v5276_v42 = vcombine.low %v4679_v39, %v4743_v20  ;;  %v3174_v38 = vsel %vm3158_vm5, %v7551_v56, 0.0  ;;  %v5250_v14 = vrot.slane %v5243_v22, %v6499_v53 }
 0x507   : > { %3175 = vadd.xlane.f32.xlu0 %v3174_v38  ;;  %v4791_v61 = vpop.trf.xlu0 }
 0x508   : > { %v5283_v10 = vrot.slane %v5276_v42, %v6491_v46  ;;  %v7560_v8 = vcombine.low %v5242_v2, %v5250_v14 }
 0x509   : > { %v4775_v27 = vpop.trf.xlu1 }
 0x50a   : > { %v5292_v12 = vcombine.low %v5275_v37, %v5283_v10  ;;  %v5414_v21 = vshrl.u32 %v7560_v8, 16 }
 0x50b   : > { %v4823_v41 = vpop.trf.xlu0 }
 0x50c   : > { %v5299_v33 = vrot.slane %v5292_v12, %v6499_v53  ;;  %v5301_v59 = vcombine.low %v4759_v60, %v4823_v41 }
 0x50d   : > { %v4807_v5 = vpop.trf.xlu1 }
 0x50e   : > { %v7563_v0 = vcombine.low %v5291_v58, %v5299_v33 }
 0x50f   : > { %v4855_v30 = vpop.trf.xlu0 }
 0x510   : > { %v5413_v51 = vpack.i.b16 %v7563_v0, %v7560_v8  ;;  %v5415_v17 = vshrl.u32 %v7563_v0, 16  ;;  %v5309_v44 = vcombine.low %v4791_v61, %v4855_v30 }
 0x511   : > { %v4839_v50 = vpop.trf.xlu1 }
 0x512   : > { %v7569_v62 = vpack.i.b16 %v5415_v17, %v5414_v21  ;;  %v5350_v13 = vcombine.low %v4775_v27, %v4839_v50  ;;  %v5316_v22 = vrot.slane %v5309_v44, %v6491_v46 }
 0x514   : > { %v5357_v37 = vrot.slane %v5350_v13, %v6491_v46 }
 0x515   : > { %v4871_v18 = vpop.trf.xlu1 }
 0x516   : > { %v5358_v39 = vcombine.low %v4807_v5, %v4871_v18 }
 0x518   : > { %v5365_v42 = vrot.slane %v5358_v39, %v6491_v46 }
 0x52e   : > { %4895 = vxpose.xlu1.c.b16.start.end [1/1] (short) (narrow) %v3971_v36, 16 }
 0x532   : > { %4927 = vxpose.xlu1.c.b16.start.end [1/1] (short) (narrow) %v3981_v55, 16 }
 0x534   : > { %4879 = vxpose.xlu0.c.b16.start.end [1/1] (short) (narrow) %v3903_v26, 16 }
 0x536   : > { %4959 = vxpose.xlu1.c.b16.start.end [1/1] (short) (narrow) %v3978_v34, 16 }
 0x538   : > { %4911 = vxpose.xlu0.c.b16.start.end [1/1] (short) (narrow) %v3913_v28, 16 }
 0x53a   : > { %4991 = vxpose.xlu1.c.b16.start.end [1/1] (short) (narrow) %v3982_v63, 16 }
 0x53c   : > { %4943 = vxpose.xlu0.c.b16.start.end [1/1] (short) (narrow) %v3910_v35, 16 }
 0x540   : > { %4975 = vxpose.xlu0.c.b16.start.end [1/1] (short) (narrow) %v3914_v4, 16 }
 0x58a   : > { %v3173_v43 = vpop.xlane.xlu1 %3172 }
 0x58b   : > { %6145 = vrcp.f32 %v3173_v43 }
 0x590   : > { %v3176_v31 = vpop.xlane.xlu0 %3175  ;;  %v4903_v16 = vpop.trf.xlu1 }
 0x591   : > { %6147 = vrcp.f32 %v3176_v31 }
 0x594   : > { %v4935_v15 = vpop.trf.xlu1 }
 0x596   : > { %v4887_v40 = vpop.trf.xlu0 }
 0x598   : > { %v6146_v23 = vpop.eup %6145  ;;  %v4967_v49 = vpop.trf.xlu1 }
 0x599   : > { %v3179_v29 = vmul.f32 %v6146_v23, %v6142_v7  ;;  %v5366_v57 = vcombine.low %v4903_v16, %v4967_v49  ;;  %v5308_v7 = vrot.slane %v5301_v59, %v6491_v46 }
 0x59a   : > { %v4919_v1 = vpop.trf.xlu0 }
 0x59b   : > { %v3181_v25 = vpack.c.bf16 %v3179_v29, %v3179_v29  ;;  %v5373_v19 = vrot.slane %v5366_v57, %v6491_v46  ;;  %v5333_v33 = vcombine.low %v5308_v7, %v5316_v22 }
 0x59c   : > { %v4999_v3 = vpop.trf.xlu1 }
 0x59d   : > { %v5374_v32 = vcombine.low %v4935_v15, %v4999_v3  ;;  %6041 = vmatprep.subr.msk.bf16.mxu0 %vm3158_vm5, %v3181_v25  ;;  %v5436_v11 = vsel %vm3158_vm5, %v3181_v25, 0  ;;  %v5340_v34 = vrot.slane %v5333_v33, %v6499_v53  ;;  %v6151_v33 = vld [vmem:[%s6449_s18] sm:$0xff]  ;;  %s5810_s18 = scalar_lea.hbm %s7690_s6, %s5945_s28 }
 0x59e   : > { %v6148_v52 = vpop.eup %6147  ;;  %v4951_v45 = vpop.trf.xlu0  ;;  %6022 = vmatpush3.bf16.xpose.msra.mxu0 %v5436_v11 }
 0x59f   : > { %v3180_v54 = vmul.f32 %v6148_v52, %v7551_v56  ;;  %v5381_v20 = vrot.slane %v5374_v32, %v6491_v46  ;;  %v5317_v38 = vcombine.low %v4887_v40, %v4951_v45  ;;  %v5382_v56 = vcombine.low %v5357_v37, %v5365_v42 }
 0x5a1   : > { %v3182_v14 = vpack.c.bf16 %v3180_v54, %v3180_v54  ;;  %v5390_v2 = vcombine.low %v5373_v19, %v5381_v20  ;;  %v5324_v21 = vrot.slane %v5317_v38, %v6491_v46  ;;  %v5389_v26 = vrot.slane %v5382_v56, %v6499_v53 }
 0x5a2   : > { %v4983_v10 = vpop.trf.xlu0 }
 0x5a3   : > { %v5325_v12 = vcombine.low %v4919_v1, %v4983_v10  ;;  %6042 = vmatprep.subr.msk.bf16.mxu1 %vm3158_vm5, %v3182_v14  ;;  %v5516_v58 = vsel %vm3158_vm5, %v3182_v14, 0  ;;  %v5397_v36 = vrot.slane %v5390_v2, %v6499_v53 }
 0x5a4   : > { %6032 = vmatpush3.bf16.xpose.msra.mxu1 %v5516_v58 }
 0x5a5   : > { %v5332_v17 = vrot.slane %v5325_v12, %v6491_v46  ;;  %6024 = vmatmul.mubr.msk.bf16.vlgmr.msra.gmra.mxu0 %vm3158_vm5, %v5407_v24  ;;  %v5398_v63 = vcombine.low %v5389_v26, %v5397_v36 }
 0x5a6   : > { %6027 = vmatprep.mubr.msk.bf16.mxu0 %vm3158_vm5, %v5413_v51 }
 0x5a7   : > { %v5341_v55 = vcombine.low %v5324_v21, %v5332_v17  ;;  %v5421_v24 = vshrl.u32 %v5398_v63, 16 }
 0x5a9   : > { %v5348_v28 = vrot.slane %v5341_v55, %v6499_v53 }
 0x5ab   : > { %v5349_v35 = vcombine.low %v5340_v34, %v5348_v28  ;;  %6034 = vmatmul.mubr.msk.bf16.vlgmr.msra.gmra.mxu1 %vm3158_vm5, %v7541_v9 }
 0x5ac   : > { %6037 = vmatprep.mubr.msk.bf16.mxu1 %vm3158_vm5, %v7569_v62 }
 0x5ad   : > { %v5419_v47 = vpack.i.b16 %v5398_v63, %v5349_v35  ;;  %v5420_v48 = vshrl.u32 %v5349_v35, 16  ;;  %v5942_v63 = vld [vmem:[%s7688_s4] ss:$0 sm:$0xff] }
 0x5af   : > { %6028 = vmatmul.mubr.msk.bf16.gmra.mxu0 %vm3158_vm5, %v5419_v47  ;;  %v5422_v8 = vpack.i.b16 %v5421_v24, %v5420_v48  ;;  %v5943_v47 = vld [vmem:[%s7689_s5] ss:$0 sm:$0xff] }
 0x5b3   : > { %6038 = vmatmul.mubr.msk.bf16.gmra.mxu1 %vm3158_vm5, %v5422_v8 }
 0x665   : > { %v6025_v0 = vpop.f32.mrf.mxu0 }
 0x667   : > { %v5472_v51 = vpop.f32.mrf.mxu0 }
 0x668   : > { %5583 = vxpose.xlu0.b32.start [1/8] (short) (narrow) %v5472_v51, 8 }
 0x669   : > { %v6026_v4 = vpop.f32.mrf.mxu0 }
 0x66b   : > { %v6035_v27 = vpop.f32.mrf.mxu1  ;;  %v5475_v60 = vpop.f32.mrf.mxu0 }
 0x66c   : > { %5584 = vxpose.xlu0.b32.cont [2/8] (short) (narrow) %v5475_v60, 8 }
 0x66d   : > { %v5552_v5 = vpop.f32.mrf.mxu1 }
 0x66e   : > { %5615 = vxpose.xlu1.b32.start [1/8] (short) (narrow) %v5552_v5, 8 }
 0x66f   : > { %v6036_v9 = vpop.f32.mrf.mxu1  ;;  %v6029_v61 = vpop.f32.mrf.mxu0 }
 0x670   : > { %5585 = vxpose.xlu0.b32.cont [3/8] (short) (narrow) %v6025_v0, 8 }
 0x671   : > { %v5555_v62 = vpop.f32.mrf.mxu1  ;;  %v5488_v50 = vpop.f32.mrf.mxu0 }
 0x672   : > { %5616 = vxpose.xlu1.b32.cont [2/8] (short) (narrow) %v5555_v62, 8 }
 0x673   : > { %v6039_v41 = vpop.f32.mrf.mxu1  ;;  %v6030_v18 = vpop.f32.mrf.mxu0 }
 0x674   : > { %5586 = vxpose.xlu0.b32.cont [4/8] (short) (narrow) %v6026_v4, 8 }
 0x675   : > { %v5568_v43 = vpop.f32.mrf.mxu1  ;;  %v5491_v30 = vpop.f32.mrf.mxu0 }
 0x676   : > { %5617 = vxpose.xlu1.b32.cont [3/8] (short) (narrow) %v6035_v27, 8 }
 0x677   : > { %v6040_v31 = vpop.f32.mrf.mxu1 }
 0x678   : > { %5587 = vxpose.xlu0.b32.cont [5/8] (short) (narrow) %v5488_v50, 8 }
 0x679   : > { %v5571_v16 = vpop.f32.mrf.mxu1 }
 0x67a   : > { %5618 = vxpose.xlu1.b32.cont [4/8] (short) (narrow) %v6036_v9, 8 }
 0x67c   : > { %5588 = vxpose.xlu0.b32.cont [6/8] (short) (narrow) %v5491_v30, 8 }
 0x67e   : > { %5619 = vxpose.xlu1.b32.cont [5/8] (short) (narrow) %v5568_v43, 8 }
 0x680   : > { %5589 = vxpose.xlu0.b32.cont [7/8] (short) (narrow) %v6029_v61, 8 }
 0x682   : > { %5620 = vxpose.xlu1.b32.cont [6/8] (short) (narrow) %v5571_v16, 8 }
 0x684   : > { %5590 = vxpose.xlu0.b32.end [8/8] (short) (narrow) %v6030_v18, 8 }
 0x686   : > { %5621 = vxpose.xlu1.b32.cont [7/8] (short) (narrow) %v6039_v41, 8 }
 0x68a   : > { %5622 = vxpose.xlu1.b32.end [8/8] (short) (narrow) %v6040_v31, 8 }
 0x6e4   : > { %v5599_v15 = vpop.trf.xlu0 }
 0x6e5   : > { %v5647_v40 = vcombine.high %v5599_v15, %v7724_v6  ;;  %v5654_v23 = vrot.slane %v5599_v15, %v6491_v46 }
 0x6e7   : > { %v5661_v57 = vrot.slane %v5647_v40, %v6491_v46 }
 0x6ea   : > { %v5631_v49 = vpop.trf.xlu1 }
 0x6eb   : > { %v5662_v1 = vcombine.high %v5631_v49, %v7724_v6  ;;  %v5669_v29 = vrot.slane %v5631_v49, %v6491_v46 }
 0x6ed   : > { %v5676_v59 = vrot.slane %v5662_v1, %v6491_v46  ;;  %v5677_v44 = vcombine.low %v5654_v23, %v5669_v29  ;;  %v5678_v25 = vcombine.high %v5654_v23, %v5669_v29 }
 0x6ef   : > { %v5685_v13 = vrot.slane %v5677_v44, %v6499_v53  ;;  %v5692_v39 = vrot.slane %v5678_v25, %v6499_v53  ;;  %v5693_v3 = vcombine.low %v5661_v57, %v5676_v59  ;;  %v5694_v52 = vcombine.high %v5661_v57, %v5676_v59 }
 0x6f1   : > { %v5701_v32 = vrot.slane %v5693_v3, %v6499_v53  ;;  %v5708_v11 = vrot.slane %v5694_v52, %v6499_v53  ;;  %v5713_v45 = vcombine.low %v5685_v13, %v5692_v39  ;;  %v5940_v6 = vcombine.high %v5685_v13, %v5692_v39 }
 0x6f3   : > { %v5720_v19 = vrot.slane %v5713_v45, %v6491_v46  ;;  %v5728_v54 = vrot.slane %v5940_v6, %v6491_v46  ;;  %v5729_v7 = vcombine.low %v5701_v32, %v5708_v11  ;;  %v5941_v22 = vcombine.high %v5701_v32, %v5708_v11 }
 0x6f5   : > { %v5736_v20 = vrot.slane %v5729_v7, %v6491_v46  ;;  %v5744_v37 = vrot.slane %v5941_v22, %v6491_v46  ;;  %v5745_v42 = vcombine.low %v5720_v19, %v5728_v54 }
 0x6f7   : > { %v5753_v38 = vcombine.low %v5736_v20, %v5744_v37  ;;  %v5752_v14 = vrot.slane %v5745_v42, %v6499_v53 }
 0x6f9   : > { %v5760_v10 = vrot.slane %v5753_v38, %v6499_v53 }
 0x6fb   : > { %v5762_v2 = vcombine.high %v5752_v14, %v5760_v10  ;;  %v5761_v12 = vcombine.low %v5752_v14, %v5760_v10 }
 0x6fd   : > { %5764 = vrot.lane.b32.xlu0 %v5762_v2, %s6293_s10  ;;  %s6297_s10 = smov [#allocation9]  }
 0x6fe   : > { %s6218_s12 = sshll.u32 %s6297_s10, 4  ;;  %s6219_s12 = int_to_ptr.vmem [resolvable:$false] %s6218_s12 }
 0x6ff   : > { %s6220_s0 = scalar_lea.vmem %s6219_s12, 256  ;;  %p6221_p10 = scmp.lt.s32.totalorder %s5813_s8, %s6219_s12 }
 0x700   : > { %p6222_p2 = scmp.lt.s32.totalorder %s6220_s0, %s6214_s7 }
 0x702   : > { %p6223_p13 = por %p6222_p2, %p6221_p10 }
 0x704   : > { %p6224_p0 = pnand %p6223_p13, %p6217_p7 }
 0x76f   : > { %v5765_v58 = vpop.permute.xlu0 %5764 }
 0x770   : > { %v5767_v56 = vsel %vm3067_vm1, %v5761_v12, %v5765_v58 }
 0x771   : > { %v5768_v21 = vadd.f32 %v6151_v33, %v5767_v56 }
 0x773   : > { %5771 = vadd.xlane.f32.xlu1 %v5768_v21 }
 0x7fc   : > { %v5772_v17 = vpop.xlane.xlu1 %5771 }
 0x7fd   : > { %v5774_v46 = vmul.f32 0.0078125, %v5772_v17 }
 0x7ff   : > { %v5775_v36 = vsub.f32 %v5768_v21, %v5774_v46 }
 0x801   : > { %v5776_v55 = vmul.f32 %v5775_v36, %v5775_v36 }
 0x803   : > { %5777 = vadd.xlane.f32.xlu0 %v5776_v55 }
 0x88c   : > { %v5778_v26 = vpop.xlane.xlu0 %5777 }
 0x88d   : > { %v5779_v53 = vmul.f32 0.0078125, %v5778_v26 }
 0x88f   : > { %v5780_v34 = vadd.f32 1e-05, %v5779_v53 }
 0x891   : > { %6149 = vrsqrt.f32 %v5780_v34 }
 0x89e   : > { %v6150_v28 = vpop.eup %6149 }
 0x89f   : > { %v5782_v35 = vmul.f32 %v6150_v28, %v5775_v36 }
 0x8a1   : > { %v5789_v48 = vmul.f32 %v5942_v63, %v5782_v35 }
 0x8a3   : > { %v5796_v24 = vadd.f32 %v5943_v47, %v5789_v48 }
 0x8a5   : > { %5797 = vst [vmem:[%s259_s21] sm:$0xff] %v5796_v24 }
 0x8a6   : > { %6227 = shalt.err (!%p6224_p0)
}
 0x8a7   : > { %s6228_s16 = scalar_lea.hbm %s5810_s18, 128  ;;  %s6232_s14 = scalar_lea.hbm %s7690_s6, 256 }
 0x8a8   : > { %p6229_p5 = scmp.ne.s32.totalorder %s5810_s18, %s6228_s16  ;;  %p6233_p1 = scmp.lt.s32.totalorder %s5810_s18, %s7690_s6 }
 0x8a9   : > { %p6234_p4 = scmp.lt.s32.totalorder %s6232_s14, %s6228_s16 }
 0x8aa   : > { %p6230_p9 = pnand %p6229_p5, %p7745_p3 }
 0x8ab   : > { %p6235_p6 = por %p6234_p4, %p6233_p1 }
 0x8ac   : > { %p6231_p12 = pneg %p6230_p9 }
 0x8ae   : > { %p6236_p8 = pnand %p6235_p6, %p6231_p12 }
 0x8b0   : > { %6239 = shalt.err (!%p6236_p8)
}
 0x8b1   : > { %6049 = dma.vmem_to_hbm [thread:$0]  (%p7745_p3), %s5813_s8, 128, %s5810_s18, %s5799_s29  }
 0x8b2 PF: > { %s5824_s28 = sand.u32 1, %s6272_s24   ;;  %p7746_p11 = scmp.ne.s32.totalorder %s7706_s30, 0 }
 0x8b3   : > { %p7747_p7 = scmp.ge.s32.totalorder %s6284_s27, 2  ;;  %s5825_s21 = scalar_lea.sflag [#allocation6], %s5824_s28 }
 0x8b5   : > { %p6060_p10 = pnand %p7747_p7, %p7746_p11 }
 0x8b7   : > { %p6061_p2 = pneg %p6060_p10 }
 0x8b9   : > { %6267 = dma.done.wait (%p6061_p2), %s5825_s21, 128  }
 0x8ba   : > { %6269 = vsyncadd (%p6061_p2), %s5825_s21, 4294967168  ;;  %p24_p13 = scmp.ge.s32.totalorder %s6390_s11, 4   ;;  %s7748_s24 = smov %s6276_s25 }
 0x8bb   : > { %s7749_s25 = smov %s6280_s26  ;;  %s7750_s26 = smov %s6407_s19 }
 0x8bc   : > { %s7751_s27 = smov %s6390_s11  ;;  %26 = sbr.rel (!%p24_p13) target bundleno = 11 (0xb), region = 89 }
 0x8c1   :  { %5830 = vsyncpa [#allocation5], 1 }
 0x8c2   :  { %5832 = vsyncpa [#allocation5 + $0x1], 1 }
 0x8c3   :  { %5833 = vsyncpa [#allocation8], 1 }
 0x8c4   :  { %5834 = vsyncpa [#allocation6], 1 }
 0x8c5   :  { %5836 = vsyncpa [#allocation6 + $0x1], 1 }

</bundles_post_ra>
